<compile_context>
chip_gen: v7x
topology: tpu7x:2x2x1
jax: 0.10.0
libtpu: 0.0.40
codegen_flags: <defaults>
</compile_context>

<pallas_src>
import functools

import jax
import jax.numpy as jnp
from jax import lax
from jax.experimental import pallas as pl
from jax.experimental.pallas import tpu as pltpu


# -----------------------------------------------------------------------------
# Single fused kernel: encoder SNN -> mean/var + reparameterization -> decoder
# -----------------------------------------------------------------------------
def _fused_svae_kernel(x_ref, w_enc_ref, b_enc_ref, w_dec_ref, b_dec_ref,
                       eps_ref, spk_d_ref, mem_d_ref, mean_ref, var_ref,
                       *, num_steps, beta, thr):
    # ---------------- Encoder ----------------
    # Static rate-coded input => synaptic drive is identical every step.
    # Compute it once on the MXU and reuse it for all T steps.
    cur_e = (jnp.dot(x_ref[...], w_enc_ref[...],
                     preferred_element_type=jnp.float32) + b_enc_ref[...])

    zeros_e = jnp.zeros_like(cur_e)

    def enc_body(_, carry):
        mem, spk, spk_sum = carry
        # Leaky integrate-and-fire, reset-by-subtraction (previous-step spike).
        mem = beta * mem + cur_e - spk * thr
        spk = (mem > thr).astype(jnp.float32)
        return mem, spk, spk_sum + spk

    # Only the spike sum over time is needed downstream (mem_e is unused).
    _, _, spk_sum = lax.fori_loop(0, num_steps, enc_body,
                                  (zeros_e, zeros_e, zeros_e), unroll=True)

    # ------------- Statistics + reparameterization -------------
    inv_t = jnp.float32(1.0 / num_steps)
    mean = spk_sum * inv_t
    # Spikes are strictly {0,1} => E[s^2] = E[s], so the population variance is
    # exactly mean - mean^2 (matches spk.var(dim=0, unbiased=False)).
    var = mean - mean * mean

    mean_ref[...] = mean
    var_ref[...] = var          # the reference calls this "log_var"

    # Reference: reparameterization(mean, exp(0.5*log_var)) with std=sqrt(var):
    #   std = sqrt(exp(0.5 * var))   -- reproduced deliberately, quirk and all.
    std = jnp.sqrt(jnp.exp(0.5 * var))
    z = mean + eps_ref[...] * std

    # ---------------- Decoder ----------------
    cur_d = (jnp.dot(z, w_dec_ref[...],
                     preferred_element_type=jnp.float32) + b_dec_ref[...])

    zeros_d = jnp.zeros_like(cur_d)

    def dec_body(t, carry):
        mem, spk = carry
        mem = beta * mem + cur_d - spk * thr
        spk = (mem > thr).astype(jnp.float32)
        spk_d_ref[t] = spk      # lane-dense [batch_tile, D_OUT] slab store
        mem_d_ref[t] = mem
        return mem, spk

    lax.fori_loop(0, num_steps, dec_body, (zeros_d, zeros_d), unroll=True)


# -----------------------------------------------------------------------------
# Full model forward (plain-JAX glue: just the NCHW flatten)
# -----------------------------------------------------------------------------
def model_forward(x_nchw, params, eps, *, num_steps, beta=0.9, thr=1.0,
                  batch_tile=None):
    B = x_nchw.shape[0]
    x = x_nchw.reshape(B, -1).astype(jnp.float32)   # [B, C*H*W]
    d_in = x.shape[1]
    latent = params["w_enc"].shape[1]
    d_out = params["w_dec"].shape[1]

    # Batch tiling: whole batch if small, otherwise sublane-aligned tiles.
    if batch_tile is None:
        batch_tile = B if B <= 8 else 8
    assert B % batch_tile == 0, "batch must be divisible by batch_tile"
    grid = (B // batch_tile,)

    kernel = functools.partial(_fused_svae_kernel,
                               num_steps=num_steps, beta=beta, thr=thr)

    in_specs = [
        pl.BlockSpec((batch_tile, d_in), lambda i: (i, 0)),     # x
        pl.BlockSpec((d_in, latent), lambda i: (0, 0)),         # w_enc (resident)
        pl.BlockSpec((1, latent), lambda i: (0, 0)),            # b_enc
        pl.BlockSpec((latent, d_out), lambda i: (0, 0)),        # w_dec (resident)
        pl.BlockSpec((1, d_out), lambda i: (0, 0)),             # b_dec
        pl.BlockSpec((batch_tile, latent), lambda i: (i, 0)),   # eps
    ]
    out_specs = (
        pl.BlockSpec((num_steps, batch_tile, d_out), lambda i: (0, i, 0)),  # spk_d
        pl.BlockSpec((num_steps, batch_tile, d_out), lambda i: (0, i, 0)),  # mem_d
        pl.BlockSpec((batch_tile, latent), lambda i: (i, 0)),               # mean
        pl.BlockSpec((batch_tile, latent), lambda i: (i, 0)),               # log_var
    )

    spk_d, mem_d, mean, log_var = pl.pallas_call(
        kernel,
        grid=grid,
        out_shape=(
            jax.ShapeDtypeStruct((num_steps, B, d_out), jnp.float32),  # spk_d
            jax.ShapeDtypeStruct((num_steps, B, d_out), jnp.float32),  # mem_d
            jax.ShapeDtypeStruct((B, latent), jnp.float32),            # mean
            jax.ShapeDtypeStruct((B, latent), jnp.float32),            # log_var
        ),
        in_specs=in_specs,
        out_specs=out_specs,
        compiler_params=pltpu.CompilerParams(
            dimension_semantics=("parallel",)),
    )(x, params["w_enc"], params["b_enc"],
      params["w_dec"], params["b_dec"], eps)

    # TODO(synk): torch.cuda.empty_cache() / plotting utilities have no Pallas
    # equivalent and do not affect forward semantics.
    return spk_d, mem_d, mean, log_var


if __name__ == "__main__":
    # Small, deterministic shapes consistent with the module's forward pass.
    B, C, H, W = 2, 4, 16, 16
    D_IN = C * H * W          # 1024
    LATENT = 32
    D_OUT = D_IN              # decoder reconstructs the flattened input size
    T = 8                     # SNN time steps

    key = jax.random.PRNGKey(0)
    kx, kwe, kwd, kbe, kbd, keps = jax.random.split(key, 6)

    x = jax.random.normal(kx, (B, C, H, W), dtype=jnp.float32)
    params = {
        "w_enc": 0.05 * jax.random.normal(kwe, (D_IN, LATENT), dtype=jnp.float32),
        "b_enc": 0.01 * jax.random.normal(kbe, (1, LATENT), dtype=jnp.float32),
        "w_dec": 0.20 * jax.random.normal(kwd, (LATENT, D_OUT), dtype=jnp.float32),
        "b_dec": 0.01 * jax.random.normal(kbd, (1, D_OUT), dtype=jnp.float32),
    }
    eps = jax.random.normal(keps, (B, LATENT), dtype=jnp.float32)

    spk_d, mem_d, mean, log_var = model_forward(x, params, eps, num_steps=T)
    jax.block_until_ready((spk_d, mem_d, mean, log_var))

    assert spk_d.shape == (T, B, D_OUT)
    assert mem_d.shape == (T, B, D_OUT)
    assert mean.shape == (B, LATENT)
    assert log_var.shape == (B, LATENT)
    assert bool(jnp.all(jnp.isfinite(mem_d)))
    assert bool(jnp.all((spk_d == 0.0) | (spk_d == 1.0)))
    print("KERNEL_OK")
</pallas_src>

<mosaic_0001>
module attributes {stable_mosaic.version = 11 : i64} {
  func.func @_fused_svae_kernel(%arg0: i32, %arg1: memref<2x1024xf32, #tpu.memory_space<vmem>>, %arg2: memref<1024x32xf32, #tpu.memory_space<vmem>>, %arg3: memref<1x32xf32, #tpu.memory_space<vmem>>, %arg4: memref<32x1024xf32, #tpu.memory_space<vmem>>, %arg5: memref<1x1024xf32, #tpu.memory_space<vmem>>, %arg6: memref<2x32xf32, #tpu.memory_space<vmem>>, %arg7: memref<8x2x1024xf32, #tpu.memory_space<vmem>>, %arg8: memref<8x2x1024xf32, #tpu.memory_space<vmem>>, %arg9: memref<2x32xf32, #tpu.memory_space<vmem>>, %arg10: memref<2x32xf32, #tpu.memory_space<vmem>>) attributes {dimension_semantics = [#tpu.dimension_semantics<parallel>], iteration_bounds = array<i64: 1>, scalar_prefetch = 0 : i64, scratch_operands = 0 : i64, tpu.core_type = #tpu.core_type<tc>, window_params = [{transform_indices = @transform_0, window_bounds = array<i64: 2, 1024>}, {pipeline_mode = #tpu.pipeline_mode<synchronous>, transform_indices = @transform_1, window_bounds = array<i64: 1024, 32>}, {pipeline_mode = #tpu.pipeline_mode<synchronous>, transform_indices = @transform_2, window_bounds = array<i64: 1, 32>}, {pipeline_mode = #tpu.pipeline_mode<synchronous>, transform_indices = @transform_3, window_bounds = array<i64: 32, 1024>}, {pipeline_mode = #tpu.pipeline_mode<synchronous>, transform_indices = @transform_4, window_bounds = array<i64: 1, 1024>}, {transform_indices = @transform_5, window_bounds = array<i64: 2, 32>}, {transform_indices = @transform_6, window_bounds = array<i64: 8, 2, 1024>}, {transform_indices = @transform_7, window_bounds = array<i64: 8, 2, 1024>}, {transform_indices = @transform_8, window_bounds = array<i64: 2, 32>}, {transform_indices = @transform_9, window_bounds = array<i64: 2, 32>}]} {
    %c0 = arith.constant 0 : index
    %c0_0 = arith.constant 0 : index
    %0 = vector.load %arg1[%c0, %c0_0] : memref<2x1024xf32, #tpu.memory_space<vmem>>, vector<2x1024xf32>
    %c0_1 = arith.constant 0 : index
    %c0_2 = arith.constant 0 : index
    %1 = vector.load %arg2[%c0_1, %c0_2] : memref<1024x32xf32, #tpu.memory_space<vmem>>, vector<1024x32xf32>
    %cst = arith.constant dense<0.000000e+00> : vector<2x32xf32>
    %2 = tpu.matmul %0, %1, %cst {dimension_numbers = #tpu.dot_dimension_numbers<[1], [0], [0], [1], [0, 0, 1, 1], [], []>} : vector<2x1024xf32>, vector<1024x32xf32>, vector<2x32xf32> -> vector<2x32xf32>
    %c0_3 = arith.constant 0 : index
    %c0_4 = arith.constant 0 : index
    %3 = vector.load %arg3[%c0_3, %c0_4] : memref<1x32xf32, #tpu.memory_space<vmem>>, vector<1x32xf32>
    %4 = vector.broadcast %3 : vector<1x32xf32> to vector<2x32xf32>
    %5 = arith.addf %2, %4 : vector<2x32xf32>
    %cst_5 = arith.constant 0.000000e+00 : f32
    %6 = vector.broadcast %cst_5 : f32 to vector<2x32xf32>
    %c0_i32 = arith.constant 0 : i32
    %cst_6 = arith.constant 0.899999976 : f32
    %7 = vector.broadcast %cst_6 : f32 to vector<2x32xf32>
    %8 = arith.mulf %7, %6 : vector<2x32xf32>
    %9 = arith.addf %8, %5 : vector<2x32xf32>
    %cst_7 = arith.constant 1.000000e+00 : f32
    %10 = vector.broadcast %cst_7 : f32 to vector<2x32xf32>
    %11 = arith.mulf %6, %10 : vector<2x32xf32>
    %12 = arith.subf %9, %11 : vector<2x32xf32>
    %cst_8 = arith.constant 1.000000e+00 : f32
    %13 = vector.broadcast %cst_8 : f32 to vector<2x32xf32>
    %14 = arith.cmpf ogt, %12, %13 : vector<2x32xf32>
    %15 = arith.extui %14 : vector<2x32xi1> to vector<2x32xi32>
    %16 = arith.sitofp %15 : vector<2x32xi32> to vector<2x32xf32>
    %17 = arith.addf %6, %16 : vector<2x32xf32>
    %c1_i32 = arith.constant 1 : i32
    %cst_9 = arith.constant 0.899999976 : f32
    %18 = vector.broadcast %cst_9 : f32 to vector<2x32xf32>
    %19 = arith.mulf %18, %12 : vector<2x32xf32>
    %20 = arith.addf %19, %5 : vector<2x32xf32>
    %cst_10 = arith.constant 1.000000e+00 : f32
    %21 = vector.broadcast %cst_10 : f32 to vector<2x32xf32>
    %22 = arith.mulf %16, %21 : vector<2x32xf32>
    %23 = arith.subf %20, %22 : vector<2x32xf32>
    %cst_11 = arith.constant 1.000000e+00 : f32
    %24 = vector.broadcast %cst_11 : f32 to vector<2x32xf32>
    %25 = arith.cmpf ogt, %23, %24 : vector<2x32xf32>
    %26 = arith.extui %25 : vector<2x32xi1> to vector<2x32xi32>
    %27 = arith.sitofp %26 : vector<2x32xi32> to vector<2x32xf32>
    %28 = arith.addf %17, %27 : vector<2x32xf32>
    %c2_i32 = arith.constant 2 : i32
    %cst_12 = arith.constant 0.899999976 : f32
    %29 = vector.broadcast %cst_12 : f32 to vector<2x32xf32>
    %30 = arith.mulf %29, %23 : vector<2x32xf32>
    %31 = arith.addf %30, %5 : vector<2x32xf32>
    %cst_13 = arith.constant 1.000000e+00 : f32
    %32 = vector.broadcast %cst_13 : f32 to vector<2x32xf32>
    %33 = arith.mulf %27, %32 : vector<2x32xf32>
    %34 = arith.subf %31, %33 : vector<2x32xf32>
    %cst_14 = arith.constant 1.000000e+00 : f32
    %35 = vector.broadcast %cst_14 : f32 to vector<2x32xf32>
    %36 = arith.cmpf ogt, %34, %35 : vector<2x32xf32>
    %37 = arith.extui %36 : vector<2x32xi1> to vector<2x32xi32>
    %38 = arith.sitofp %37 : vector<2x32xi32> to vector<2x32xf32>
    %39 = arith.addf %28, %38 : vector<2x32xf32>
    %c3_i32 = arith.constant 3 : i32
    %cst_15 = arith.constant 0.899999976 : f32
    %40 = vector.broadcast %cst_15 : f32 to vector<2x32xf32>
    %41 = arith.mulf %40, %34 : vector<2x32xf32>
    %42 = arith.addf %41, %5 : vector<2x32xf32>
    %cst_16 = arith.constant 1.000000e+00 : f32
    %43 = vector.broadcast %cst_16 : f32 to vector<2x32xf32>
    %44 = arith.mulf %38, %43 : vector<2x32xf32>
    %45 = arith.subf %42, %44 : vector<2x32xf32>
    %cst_17 = arith.constant 1.000000e+00 : f32
    %46 = vector.broadcast %cst_17 : f32 to vector<2x32xf32>
    %47 = arith.cmpf ogt, %45, %46 : vector<2x32xf32>
    %48 = arith.extui %47 : vector<2x32xi1> to vector<2x32xi32>
    %49 = arith.sitofp %48 : vector<2x32xi32> to vector<2x32xf32>
    %50 = arith.addf %39, %49 : vector<2x32xf32>
    %c4_i32 = arith.constant 4 : i32
    %cst_18 = arith.constant 0.899999976 : f32
    %51 = vector.broadcast %cst_18 : f32 to vector<2x32xf32>
    %52 = arith.mulf %51, %45 : vector<2x32xf32>
    %53 = arith.addf %52, %5 : vector<2x32xf32>
    %cst_19 = arith.constant 1.000000e+00 : f32
    %54 = vector.broadcast %cst_19 : f32 to vector<2x32xf32>
    %55 = arith.mulf %49, %54 : vector<2x32xf32>
    %56 = arith.subf %53, %55 : vector<2x32xf32>
    %cst_20 = arith.constant 1.000000e+00 : f32
    %57 = vector.broadcast %cst_20 : f32 to vector<2x32xf32>
    %58 = arith.cmpf ogt, %56, %57 : vector<2x32xf32>
    %59 = arith.extui %58 : vector<2x32xi1> to vector<2x32xi32>
    %60 = arith.sitofp %59 : vector<2x32xi32> to vector<2x32xf32>
    %61 = arith.addf %50, %60 : vector<2x32xf32>
    %c5_i32 = arith.constant 5 : i32
    %cst_21 = arith.constant 0.899999976 : f32
    %62 = vector.broadcast %cst_21 : f32 to vector<2x32xf32>
    %63 = arith.mulf %62, %56 : vector<2x32xf32>
    %64 = arith.addf %63, %5 : vector<2x32xf32>
    %cst_22 = arith.constant 1.000000e+00 : f32
    %65 = vector.broadcast %cst_22 : f32 to vector<2x32xf32>
    %66 = arith.mulf %60, %65 : vector<2x32xf32>
    %67 = arith.subf %64, %66 : vector<2x32xf32>
    %cst_23 = arith.constant 1.000000e+00 : f32
    %68 = vector.broadcast %cst_23 : f32 to vector<2x32xf32>
    %69 = arith.cmpf ogt, %67, %68 : vector<2x32xf32>
    %70 = arith.extui %69 : vector<2x32xi1> to vector<2x32xi32>
    %71 = arith.sitofp %70 : vector<2x32xi32> to vector<2x32xf32>
    %72 = arith.addf %61, %71 : vector<2x32xf32>
    %c6_i32 = arith.constant 6 : i32
    %cst_24 = arith.constant 0.899999976 : f32
    %73 = vector.broadcast %cst_24 : f32 to vector<2x32xf32>
    %74 = arith.mulf %73, %67 : vector<2x32xf32>
    %75 = arith.addf %74, %5 : vector<2x32xf32>
    %cst_25 = arith.constant 1.000000e+00 : f32
    %76 = vector.broadcast %cst_25 : f32 to vector<2x32xf32>
    %77 = arith.mulf %71, %76 : vector<2x32xf32>
    %78 = arith.subf %75, %77 : vector<2x32xf32>
    %cst_26 = arith.constant 1.000000e+00 : f32
    %79 = vector.broadcast %cst_26 : f32 to vector<2x32xf32>
    %80 = arith.cmpf ogt, %78, %79 : vector<2x32xf32>
    %81 = arith.extui %80 : vector<2x32xi1> to vector<2x32xi32>
    %82 = arith.sitofp %81 : vector<2x32xi32> to vector<2x32xf32>
    %83 = arith.addf %72, %82 : vector<2x32xf32>
    %c7_i32 = arith.constant 7 : i32
    %cst_27 = arith.constant 0.899999976 : f32
    %84 = vector.broadcast %cst_27 : f32 to vector<2x32xf32>
    %85 = arith.mulf %84, %78 : vector<2x32xf32>
    %86 = arith.addf %85, %5 : vector<2x32xf32>
    %cst_28 = arith.constant 1.000000e+00 : f32
    %87 = vector.broadcast %cst_28 : f32 to vector<2x32xf32>
    %88 = arith.mulf %82, %87 : vector<2x32xf32>
    %89 = arith.subf %86, %88 : vector<2x32xf32>
    %cst_29 = arith.constant 1.000000e+00 : f32
    %90 = vector.broadcast %cst_29 : f32 to vector<2x32xf32>
    %91 = arith.cmpf ogt, %89, %90 : vector<2x32xf32>
    %92 = arith.extui %91 : vector<2x32xi1> to vector<2x32xi32>
    %93 = arith.sitofp %92 : vector<2x32xi32> to vector<2x32xf32>
    %94 = arith.addf %83, %93 : vector<2x32xf32>
    %cst_30 = arith.constant 1.250000e-01 : f32
    %95 = vector.broadcast %cst_30 : f32 to vector<2x32xf32>
    %96 = arith.mulf %94, %95 : vector<2x32xf32>
    %97 = arith.mulf %96, %96 : vector<2x32xf32>
    %98 = arith.subf %96, %97 : vector<2x32xf32>
    %c0_31 = arith.constant 0 : index
    %c0_32 = arith.constant 0 : index
    %99 = vector.load %arg9[%c0_31, %c0_32] : memref<2x32xf32, #tpu.memory_space<vmem>>, vector<2x32xf32>
    tpu.vector_store %arg9[%c0_31, %c0_32], %96 {strides = array<i32>} : memref<2x32xf32, #tpu.memory_space<vmem>>, vector<2x32xf32>,
    %c0_33 = arith.constant 0 : index
    %c0_34 = arith.constant 0 : index
    %100 = vector.load %arg10[%c0_33, %c0_34] : memref<2x32xf32, #tpu.memory_space<vmem>>, vector<2x32xf32>
    tpu.vector_store %arg10[%c0_33, %c0_34], %98 {strides = array<i32>} : memref<2x32xf32, #tpu.memory_space<vmem>>, vector<2x32xf32>,
    %cst_35 = arith.constant 5.000000e-01 : f32
    %101 = vector.broadcast %cst_35 : f32 to vector<2x32xf32>
    %102 = arith.mulf %101, %98 : vector<2x32xf32>
    %103 = math.exp %102 : vector<2x32xf32>
    %104 = math.sqrt %103 : vector<2x32xf32>
    %c0_36 = arith.constant 0 : index
    %c0_37 = arith.constant 0 : index
    %105 = vector.load %arg6[%c0_36, %c0_37] : memref<2x32xf32, #tpu.memory_space<vmem>>, vector<2x32xf32>
    %106 = arith.mulf %105, %104 : vector<2x32xf32>
    %107 = arith.addf %96, %106 : vector<2x32xf32>
    %c0_38 = arith.constant 0 : index
    %c0_39 = arith.constant 0 : index
    %108 = vector.load %arg4[%c0_38, %c0_39] : memref<32x1024xf32, #tpu.memory_space<vmem>>, vector<32x1024xf32>
    %cst_40 = arith.constant dense<0.000000e+00> : vector<2x1024xf32>
    %109 = tpu.matmul %107, %108, %cst_40 {dimension_numbers = #tpu.dot_dimension_numbers<[1], [0], [0], [1], [0, 0, 1, 1], [], []>} : vector<2x32xf32>, vector<32x1024xf32>, vector<2x1024xf32> -> vector<2x1024xf32>
    %c0_41 = arith.constant 0 : index
    %c0_42 = arith.constant 0 : index
    %110 = vector.load %arg5[%c0_41, %c0_42] : memref<1x1024xf32, #tpu.memory_space<vmem>>, vector<1x1024xf32>
    %111 = vector.broadcast %110 : vector<1x1024xf32> to vector<2x1024xf32>
    %112 = arith.addf %109, %111 : vector<2x1024xf32>
    %cst_43 = arith.constant 0.000000e+00 : f32
    %113 = vector.broadcast %cst_43 : f32 to vector<2x1024xf32>
    %c0_i32_44 = arith.constant 0 : i32
    %cst_45 = arith.constant 0.899999976 : f32
    %114 = vector.broadcast %cst_45 : f32 to vector<2x1024xf32>
    %115 = arith.mulf %114, %113 : vector<2x1024xf32>
    %116 = arith.addf %115, %112 : vector<2x1024xf32>
    %cst_46 = arith.constant 1.000000e+00 : f32
    %117 = vector.broadcast %cst_46 : f32 to vector<2x1024xf32>
    %118 = arith.mulf %113, %117 : vector<2x1024xf32>
    %119 = arith.subf %116, %118 : vector<2x1024xf32>
    %cst_47 = arith.constant 1.000000e+00 : f32
    %120 = vector.broadcast %cst_47 : f32 to vector<2x1024xf32>
    %121 = arith.cmpf ogt, %119, %120 : vector<2x1024xf32>
    %122 = arith.extui %121 : vector<2x1024xi1> to vector<2x1024xi32>
    %123 = arith.sitofp %122 : vector<2x1024xi32> to vector<2x1024xf32>
    %124 = arith.index_cast %c0_i32_44 : i32 to index
    %c0_48 = arith.constant 0 : index
    %c0_49 = arith.constant 0 : index
    %125 = vector.load %arg7[%124, %c0_48, %c0_49] : memref<8x2x1024xf32, #tpu.memory_space<vmem>>, vector<1x2x1024xf32>
    %126 = vector.shape_cast %125 : vector<1x2x1024xf32> to vector<2x1024xf32>
    %127 = vector.shape_cast %123 : vector<2x1024xf32> to vector<1x2x1024xf32>
    tpu.vector_store %arg7[%124, %c0_48, %c0_49], %127 {strides = array<i32>} : memref<8x2x1024xf32, #tpu.memory_space<vmem>>, vector<1x2x1024xf32>,
    %128 = arith.index_cast %c0_i32_44 : i32 to index
    %c0_50 = arith.constant 0 : index
    %c0_51 = arith.constant 0 : index
    %129 = vector.load %arg8[%128, %c0_50, %c0_51] : memref<8x2x1024xf32, #tpu.memory_space<vmem>>, vector<1x2x1024xf32>
    %130 = vector.shape_cast %129 : vector<1x2x1024xf32> to vector<2x1024xf32>
    %131 = vector.shape_cast %119 : vector<2x1024xf32> to vector<1x2x1024xf32>
    tpu.vector_store %arg8[%128, %c0_50, %c0_51], %131 {strides = array<i32>} : memref<8x2x1024xf32, #tpu.memory_space<vmem>>, vector<1x2x1024xf32>,
    %c1_i32_52 = arith.constant 1 : i32
    %cst_53 = arith.constant 0.899999976 : f32
    %132 = vector.broadcast %cst_53 : f32 to vector<2x1024xf32>
    %133 = arith.mulf %132, %119 : vector<2x1024xf32>
    %134 = arith.addf %133, %112 : vector<2x1024xf32>
    %cst_54 = arith.constant 1.000000e+00 : f32
    %135 = vector.broadcast %cst_54 : f32 to vector<2x1024xf32>
    %136 = arith.mulf %123, %135 : vector<2x1024xf32>
    %137 = arith.subf %134, %136 : vector<2x1024xf32>
    %cst_55 = arith.constant 1.000000e+00 : f32
    %138 = vector.broadcast %cst_55 : f32 to vector<2x1024xf32>
    %139 = arith.cmpf ogt, %137, %138 : vector<2x1024xf32>
    %140 = arith.extui %139 : vector<2x1024xi1> to vector<2x1024xi32>
    %141 = arith.sitofp %140 : vector<2x1024xi32> to vector<2x1024xf32>
    %142 = arith.index_cast %c1_i32_52 : i32 to index
    %c0_56 = arith.constant 0 : index
    %c0_57 = arith.constant 0 : index
    %143 = vector.load %arg7[%142, %c0_56, %c0_57] : memref<8x2x1024xf32, #tpu.memory_space<vmem>>, vector<1x2x1024xf32>
    %144 = vector.shape_cast %143 : vector<1x2x1024xf32> to vector<2x1024xf32>
    %145 = vector.shape_cast %141 : vector<2x1024xf32> to vector<1x2x1024xf32>
    tpu.vector_store %arg7[%142, %c0_56, %c0_57], %145 {strides = array<i32>} : memref<8x2x1024xf32, #tpu.memory_space<vmem>>, vector<1x2x1024xf32>,
    %146 = arith.index_cast %c1_i32_52 : i32 to index
    %c0_58 = arith.constant 0 : index
    %c0_59 = arith.constant 0 : index
    %147 = vector.load %arg8[%146, %c0_58, %c0_59] : memref<8x2x1024xf32, #tpu.memory_space<vmem>>, vector<1x2x1024xf32>
    %148 = vector.shape_cast %147 : vector<1x2x1024xf32> to vector<2x1024xf32>
    %149 = vector.shape_cast %137 : vector<2x1024xf32> to vector<1x2x1024xf32>
    tpu.vector_store %arg8[%146, %c0_58, %c0_59], %149 {strides = array<i32>} : memref<8x2x1024xf32, #tpu.memory_space<vmem>>, vector<1x2x1024xf32>,
    %c2_i32_60 = arith.constant 2 : i32
    %cst_61 = arith.constant 0.899999976 : f32
    %150 = vector.broadcast %cst_61 : f32 to vector<2x1024xf32>
    %151 = arith.mulf %150, %137 : vector<2x1024xf32>
    %152 = arith.addf %151, %112 : vector<2x1024xf32>
    %cst_62 = arith.constant 1.000000e+00 : f32
    %153 = vector.broadcast %cst_62 : f32 to vector<2x1024xf32>
    %154 = arith.mulf %141, %153 : vector<2x1024xf32>
    %155 = arith.subf %152, %154 : vector<2x1024xf32>
    %cst_63 = arith.constant 1.000000e+00 : f32
    %156 = vector.broadcast %cst_63 : f32 to vector<2x1024xf32>
    %157 = arith.cmpf ogt, %155, %156 : vector<2x1024xf32>
    %158 = arith.extui %157 : vector<2x1024xi1> to vector<2x1024xi32>
    %159 = arith.sitofp %158 : vector<2x1024xi32> to vector<2x1024xf32>
    %160 = arith.index_cast %c2_i32_60 : i32 to index
    %c0_64 = arith.constant 0 : index
    %c0_65 = arith.constant 0 : index
    %161 = vector.load %arg7[%160, %c0_64, %c0_65] : memref<8x2x1024xf32, #tpu.memory_space<vmem>>, vector<1x2x1024xf32>
    %162 = vector.shape_cast %161 : vector<1x2x1024xf32> to vector<2x1024xf32>
    %163 = vector.shape_cast %159 : vector<2x1024xf32> to vector<1x2x1024xf32>
    tpu.vector_store %arg7[%160, %c0_64, %c0_65], %163 {strides = array<i32>} : memref<8x2x1024xf32, #tpu.memory_space<vmem>>, vector<1x2x1024xf32>,
    %164 = arith.index_cast %c2_i32_60 : i32 to index
    %c0_66 = arith.constant 0 : index
    %c0_67 = arith.constant 0 : index
    %165 = vector.load %arg8[%164, %c0_66, %c0_67] : memref<8x2x1024xf32, #tpu.memory_space<vmem>>, vector<1x2x1024xf32>
    %166 = vector.shape_cast %165 : vector<1x2x1024xf32> to vector<2x1024xf32>
    %167 = vector.shape_cast %155 : vector<2x1024xf32> to vector<1x2x1024xf32>
    tpu.vector_store %arg8[%164, %c0_66, %c0_67], %167 {strides = array<i32>} : memref<8x2x1024xf32, #tpu.memory_space<vmem>>, vector<1x2x1024xf32>,
    %c3_i32_68 = arith.constant 3 : i32
    %cst_69 = arith.constant 0.899999976 : f32
    %168 = vector.broadcast %cst_69 : f32 to vector<2x1024xf32>
    %169 = arith.mulf %168, %155 : vector<2x1024xf32>
    %170 = arith.addf %169, %112 : vector<2x1024xf32>
    %cst_70 = arith.constant 1.000000e+00 : f32
    %171 = vector.broadcast %cst_70 : f32 to vector<2x1024xf32>
    %172 = arith.mulf %159, %171 : vector<2x1024xf32>
    %173 = arith.subf %170, %172 : vector<2x1024xf32>
    %cst_71 = arith.constant 1.000000e+00 : f32
    %174 = vector.broadcast %cst_71 : f32 to vector<2x1024xf32>
    %175 = arith.cmpf ogt, %173, %174 : vector<2x1024xf32>
    %176 = arith.extui %175 : vector<2x1024xi1> to vector<2x1024xi32>
    %177 = arith.sitofp %176 : vector<2x1024xi32> to vector<2x1024xf32>
    %178 = arith.index_cast %c3_i32_68 : i32 to index
    %c0_72 = arith.constant 0 : index
    %c0_73 = arith.constant 0 : index
    %179 = vector.load %arg7[%178, %c0_72, %c0_73] : memref<8x2x1024xf32, #tpu.memory_space<vmem>>, vector<1x2x1024xf32>
    %180 = vector.shape_cast %179 : vector<1x2x1024xf32> to vector<2x1024xf32>
    %181 = vector.shape_cast %177 : vector<2x1024xf32> to vector<1x2x1024xf32>
    tpu.vector_store %arg7[%178, %c0_72, %c0_73], %181 {strides = array<i32>} : memref<8x2x1024xf32, #tpu.memory_space<vmem>>, vector<1x2x1024xf32>,
    %182 = arith.index_cast %c3_i32_68 : i32 to index
    %c0_74 = arith.constant 0 : index
    %c0_75 = arith.constant 0 : index
    %183 = vector.load %arg8[%182, %c0_74, %c0_75] : memref<8x2x1024xf32, #tpu.memory_space<vmem>>, vector<1x2x1024xf32>
    %184 = vector.shape_cast %183 : vector<1x2x1024xf32> to vector<2x1024xf32>
    %185 = vector.shape_cast %173 : vector<2x1024xf32> to vector<1x2x1024xf32>
    tpu.vector_store %arg8[%182, %c0_74, %c0_75], %185 {strides = array<i32>} : memref<8x2x1024xf32, #tpu.memory_space<vmem>>, vector<1x2x1024xf32>,
    %c4_i32_76 = arith.constant 4 : i32
    %cst_77 = arith.constant 0.899999976 : f32
    %186 = vector.broadcast %cst_77 : f32 to vector<2x1024xf32>
    %187 = arith.mulf %186, %173 : vector<2x1024xf32>
    %188 = arith.addf %187, %112 : vector<2x1024xf32>
    %cst_78 = arith.constant 1.000000e+00 : f32
    %189 = vector.broadcast %cst_78 : f32 to vector<2x1024xf32>
    %190 = arith.mulf %177, %189 : vector<2x1024xf32>
    %191 = arith.subf %188, %190 : vector<2x1024xf32>
    %cst_79 = arith.constant 1.000000e+00 : f32
    %192 = vector.broadcast %cst_79 : f32 to vector<2x1024xf32>
    %193 = arith.cmpf ogt, %191, %192 : vector<2x1024xf32>
    %194 = arith.extui %193 : vector<2x1024xi1> to vector<2x1024xi32>
    %195 = arith.sitofp %194 : vector<2x1024xi32> to vector<2x1024xf32>
    %196 = arith.index_cast %c4_i32_76 : i32 to index
    %c0_80 = arith.constant 0 : index
    %c0_81 = arith.constant 0 : index
    %197 = vector.load %arg7[%196, %c0_80, %c0_81] : memref<8x2x1024xf32, #tpu.memory_space<vmem>>, vector<1x2x1024xf32>
    %198 = vector.shape_cast %197 : vector<1x2x1024xf32> to vector<2x1024xf32>
    %199 = vector.shape_cast %195 : vector<2x1024xf32> to vector<1x2x1024xf32>
    tpu.vector_store %arg7[%196, %c0_80, %c0_81], %199 {strides = array<i32>} : memref<8x2x1024xf32, #tpu.memory_space<vmem>>, vector<1x2x1024xf32>,
    %200 = arith.index_cast %c4_i32_76 : i32 to index
    %c0_82 = arith.constant 0 : index
    %c0_83 = arith.constant 0 : index
    %201 = vector.load %arg8[%200, %c0_82, %c0_83] : memref<8x2x1024xf32, #tpu.memory_space<vmem>>, vector<1x2x1024xf32>
    %202 = vector.shape_cast %201 : vector<1x2x1024xf32> to vector<2x1024xf32>
    %203 = vector.shape_cast %191 : vector<2x1024xf32> to vector<1x2x1024xf32>
    tpu.vector_store %arg8[%200, %c0_82, %c0_83], %203 {strides = array<i32>} : memref<8x2x1024xf32, #tpu.memory_space<vmem>>, vector<1x2x1024xf32>,
    %c5_i32_84 = arith.constant 5 : i32
    %cst_85 = arith.constant 0.899999976 : f32
    %204 = vector.broadcast %cst_85 : f32 to vector<2x1024xf32>
    %205 = arith.mulf %204, %191 : vector<2x1024xf32>
    %206 = arith.addf %205, %112 : vector<2x1024xf32>
    %cst_86 = arith.constant 1.000000e+00 : f32
    %207 = vector.broadcast %cst_86 : f32 to vector<2x1024xf32>
    %208 = arith.mulf %195, %207 : vector<2x1024xf32>
    %209 = arith.subf %206, %208 : vector<2x1024xf32>
    %cst_87 = arith.constant 1.000000e+00 : f32
    %210 = vector.broadcast %cst_87 : f32 to vector<2x1024xf32>
    %211 = arith.cmpf ogt, %209, %210 : vector<2x1024xf32>
    %212 = arith.extui %211 : vector<2x1024xi1> to vector<2x1024xi32>
    %213 = arith.sitofp %212 : vector<2x1024xi32> to vector<2x1024xf32>
    %214 = arith.index_cast %c5_i32_84 : i32 to index
    %c0_88 = arith.constant 0 : index
    %c0_89 = arith.constant 0 : index
    %215 = vector.load %arg7[%214, %c0_88, %c0_89] : memref<8x2x1024xf32, #tpu.memory_space<vmem>>, vector<1x2x1024xf32>
    %216 = vector.shape_cast %215 : vector<1x2x1024xf32> to vector<2x1024xf32>
    %217 = vector.shape_cast %213 : vector<2x1024xf32> to vector<1x2x1024xf32>
    tpu.vector_store %arg7[%214, %c0_88, %c0_89], %217 {strides = array<i32>} : memref<8x2x1024xf32, #tpu.memory_space<vmem>>, vector<1x2x1024xf32>,
    %218 = arith.index_cast %c5_i32_84 : i32 to index
    %c0_90 = arith.constant 0 : index
    %c0_91 = arith.constant 0 : index
    %219 = vector.load %arg8[%218, %c0_90, %c0_91] : memref<8x2x1024xf32, #tpu.memory_space<vmem>>, vector<1x2x1024xf32>
    %220 = vector.shape_cast %219 : vector<1x2x1024xf32> to vector<2x1024xf32>
    %221 = vector.shape_cast %209 : vector<2x1024xf32> to vector<1x2x1024xf32>
    tpu.vector_store %arg8[%218, %c0_90, %c0_91], %221 {strides = array<i32>} : memref<8x2x1024xf32, #tpu.memory_space<vmem>>, vector<1x2x1024xf32>,
    %c6_i32_92 = arith.constant 6 : i32
    %cst_93 = arith.constant 0.899999976 : f32
    %222 = vector.broadcast %cst_93 : f32 to vector<2x1024xf32>
    %223 = arith.mulf %222, %209 : vector<2x1024xf32>
    %224 = arith.addf %223, %112 : vector<2x1024xf32>
    %cst_94 = arith.constant 1.000000e+00 : f32
    %225 = vector.broadcast %cst_94 : f32 to vector<2x1024xf32>
    %226 = arith.mulf %213, %225 : vector<2x1024xf32>
    %227 = arith.subf %224, %226 : vector<2x1024xf32>
    %cst_95 = arith.constant 1.000000e+00 : f32
    %228 = vector.broadcast %cst_95 : f32 to vector<2x1024xf32>
    %229 = arith.cmpf ogt, %227, %228 : vector<2x1024xf32>
    %230 = arith.extui %229 : vector<2x1024xi1> to vector<2x1024xi32>
    %231 = arith.sitofp %230 : vector<2x1024xi32> to vector<2x1024xf32>
    %232 = arith.index_cast %c6_i32_92 : i32 to index
    %c0_96 = arith.constant 0 : index
    %c0_97 = arith.constant 0 : index
    %233 = vector.load %arg7[%232, %c0_96, %c0_97] : memref<8x2x1024xf32, #tpu.memory_space<vmem>>, vector<1x2x1024xf32>
    %234 = vector.shape_cast %233 : vector<1x2x1024xf32> to vector<2x1024xf32>
    %235 = vector.shape_cast %231 : vector<2x1024xf32> to vector<1x2x1024xf32>
    tpu.vector_store %arg7[%232, %c0_96, %c0_97], %235 {strides = array<i32>} : memref<8x2x1024xf32, #tpu.memory_space<vmem>>, vector<1x2x1024xf32>,
    %236 = arith.index_cast %c6_i32_92 : i32 to index
    %c0_98 = arith.constant 0 : index
    %c0_99 = arith.constant 0 : index
    %237 = vector.load %arg8[%236, %c0_98, %c0_99] : memref<8x2x1024xf32, #tpu.memory_space<vmem>>, vector<1x2x1024xf32>
    %238 = vector.shape_cast %237 : vector<1x2x1024xf32> to vector<2x1024xf32>
    %239 = vector.shape_cast %227 : vector<2x1024xf32> to vector<1x2x1024xf32>
    tpu.vector_store %arg8[%236, %c0_98, %c0_99], %239 {strides = array<i32>} : memref<8x2x1024xf32, #tpu.memory_space<vmem>>, vector<1x2x1024xf32>,
    %c7_i32_100 = arith.constant 7 : i32
    %cst_101 = arith.constant 0.899999976 : f32
    %240 = vector.broadcast %cst_101 : f32 to vector<2x1024xf32>
    %241 = arith.mulf %240, %227 : vector<2x1024xf32>
    %242 = arith.addf %241, %112 : vector<2x1024xf32>
    %cst_102 = arith.constant 1.000000e+00 : f32
    %243 = vector.broadcast %cst_102 : f32 to vector<2x1024xf32>
    %244 = arith.mulf %231, %243 : vector<2x1024xf32>
    %245 = arith.subf %242, %244 : vector<2x1024xf32>
    %cst_103 = arith.constant 1.000000e+00 : f32
    %246 = vector.broadcast %cst_103 : f32 to vector<2x1024xf32>
    %247 = arith.cmpf ogt, %245, %246 : vector<2x1024xf32>
    %248 = arith.extui %247 : vector<2x1024xi1> to vector<2x1024xi32>
    %249 = arith.sitofp %248 : vector<2x1024xi32> to vector<2x1024xf32>
    %250 = arith.index_cast %c7_i32_100 : i32 to index
    %c0_104 = arith.constant 0 : index
    %c0_105 = arith.constant 0 : index
    %251 = vector.load %arg7[%250, %c0_104, %c0_105] : memref<8x2x1024xf32, #tpu.memory_space<vmem>>, vector<1x2x1024xf32>
    %252 = vector.shape_cast %251 : vector<1x2x1024xf32> to vector<2x1024xf32>
    %253 = vector.shape_cast %249 : vector<2x1024xf32> to vector<1x2x1024xf32>
    tpu.vector_store %arg7[%250, %c0_104, %c0_105], %253 {strides = array<i32>} : memref<8x2x1024xf32, #tpu.memory_space<vmem>>, vector<1x2x1024xf32>,
    %254 = arith.index_cast %c7_i32_100 : i32 to index
    %c0_106 = arith.constant 0 : index
    %c0_107 = arith.constant 0 : index
    %255 = vector.load %arg8[%254, %c0_106, %c0_107] : memref<8x2x1024xf32, #tpu.memory_space<vmem>>, vector<1x2x1024xf32>
    %256 = vector.shape_cast %255 : vector<1x2x1024xf32> to vector<2x1024xf32>
    %257 = vector.shape_cast %245 : vector<2x1024xf32> to vector<1x2x1024xf32>
    tpu.vector_store %arg8[%254, %c0_106, %c0_107], %257 {strides = array<i32>} : memref<8x2x1024xf32, #tpu.memory_space<vmem>>, vector<1x2x1024xf32>,
    %c8_i32 = arith.constant 8 : i32
    return
  }
  func.func @transform_0(%arg0: i32) -> (i32, i32) {
    %c0_i32 = arith.constant 0 : i32
    %c0_i32_0 = arith.constant 0 : i32
    return %arg0, %c0_i32 : i32, i32
  }
  func.func @transform_1(%arg0: i32) -> (i32, i32) {
    %c0_i32 = arith.constant 0 : i32
    %c0_i32_0 = arith.constant 0 : i32
    %c0_i32_1 = arith.constant 0 : i32
    return %c0_i32, %c0_i32_0 : i32, i32
  }
  func.func @transform_2(%arg0: i32) -> (i32, i32) {
    %c0_i32 = arith.constant 0 : i32
    %c0_i32_0 = arith.constant 0 : i32
    %c0_i32_1 = arith.constant 0 : i32
    return %c0_i32, %c0_i32_0 : i32, i32
  }
  func.func @transform_3(%arg0: i32) -> (i32, i32) {
    %c0_i32 = arith.constant 0 : i32
    %c0_i32_0 = arith.constant 0 : i32
    %c0_i32_1 = arith.constant 0 : i32
    return %c0_i32, %c0_i32_0 : i32, i32
  }
  func.func @transform_4(%arg0: i32) -> (i32, i32) {
    %c0_i32 = arith.constant 0 : i32
    %c0_i32_0 = arith.constant 0 : i32
    %c0_i32_1 = arith.constant 0 : i32
    return %c0_i32, %c0_i32_0 : i32, i32
  }
  func.func @transform_5(%arg0: i32) -> (i32, i32) {
    %c0_i32 = arith.constant 0 : i32
    %c0_i32_0 = arith.constant 0 : i32
    return %arg0, %c0_i32 : i32, i32
  }
  func.func @transform_6(%arg0: i32) -> (i32, i32, i32) {
    %c0_i32 = arith.constant 0 : i32
    %c0_i32_0 = arith.constant 0 : i32
    %c0_i32_1 = arith.constant 0 : i32
    return %c0_i32, %arg0, %c0_i32_0 : i32, i32, i32
  }
  func.func @transform_7(%arg0: i32) -> (i32, i32, i32) {
    %c0_i32 = arith.constant 0 : i32
    %c0_i32_0 = arith.constant 0 : i32
    %c0_i32_1 = arith.constant 0 : i32
    return %c0_i32, %arg0, %c0_i32_0 : i32, i32, i32
  }
  func.func @transform_8(%arg0: i32) -> (i32, i32) {
    %c0_i32 = arith.constant 0 : i32
    %c0_i32_0 = arith.constant 0 : i32
    return %arg0, %c0_i32 : i32, i32
  }
  func.func @transform_9(%arg0: i32) -> (i32, i32) {
    %c0_i32 = arith.constant 0 : i32
    %c0_i32_0 = arith.constant 0 : i32
    return %arg0, %c0_i32 : i32, i32
  }
}

</mosaic_0001>

<bundles_post_ra>
// kernel: tpu_custom_call.1
= control target key start
LH: loop header
LB: loop body
LE: loop exit
PB: predicated region body
PF: predicated region fallthrough
CT: control target
= control target key end

     0   :  { %15 = vsyncpa [#allocation3], 0  ;;  %s3816_s0 = inlined_call_operand.vmem [shape: f32[2,1024], index: 0, kind: input, shape index: {}]   ;;  %s3817_s1 = inlined_call_operand.vmem [shape: f32[1024,32], index: 1, kind: input, shape index: {}]   ;;  %s3818_s2 = inlined_call_operand.vmem [shape: f32[1,32], index: 2, kind: input, shape index: {}]   ;;  %s3819_s3 = inlined_call_operand.vmem [shape: f32[32,1024], index: 3, kind: input, shape index: {}]   ;;  %s3820_s4 = inlined_call_operand.vmem [shape: f32[1,1024], index: 4, kind: input, shape index: {}]   ;;  %s3821_s5 = inlined_call_operand.vmem [shape: f32[2,32], index: 5, kind: input, shape index: {}]   ;;  %s3822_s6 = inlined_call_operand.hbm [shape: f32[8,2,1024], index: 6, kind: output, shape index: {0}]   ;;  %s3823_s7 = inlined_call_operand.hbm [shape: f32[8,2,1024], index: 7, kind: output, shape index: {1}]   ;;  %s3824_s8 = inlined_call_operand.hbm [shape: f32[2,32], index: 8, kind: output, shape index: {2}]   ;;  %s3825_s9 = inlined_call_operand.hbm [shape: f32[2,32], index: 9, kind: output, shape index: {3}]  }
   0x1   :  { %16 = vsyncpa [#allocation5], 0  ;;  %v48_v0 = vld [vmem:[%s3817_s1 + $0x80] sm:$0xff]  ;;  %v49_v1 = vld [vmem:[%s3817_s1 + $0x88] sm:$0xff]  ;;  %v2588_v47 = vmov 1983009808   ;;  %v173_v49 = vlaneseq }
   0x2   :  { %v32_v2 = vld [vmem:[%s3817_s1] sm:$0xff]  ;;  %v2320_v3 = vpack.c.bf16 %v49_v1, %v48_v0  ;;  %v33_v4 = vld [vmem:[%s3817_s1 + $0x8] sm:$0xff]  ;;  %v50_v11 = vld [vmem:[%s3817_s1 + $0x90] sm:$0xff]  ;;  %v171_v48 = vunpack.c.l.s4 %v2588_v47 }
   0x3   :  { %v80_v5 = vld [vmem:[%s3817_s1 + $0x180] sm:$0xff]  ;;  %v81_v6 = vld [vmem:[%s3817_s1 + $0x188] sm:$0xff]  ;;  %v2322_v7 = vpack.c.bf16 %v33_v4, %v32_v2  ;;  %v51_v13 = vld [vmem:[%s3817_s1 + $0x98] sm:$0xff]  ;;  %v2772_v0 = vshrl.u32 %v173_v49, 7 }
   0x4   :  { %v2352_v8 = vpack.c.bf16 %v81_v6, %v80_v5  ;;  %v64_v9 = vld [vmem:[%s3817_s1 + $0x100] sm:$0xff]  ;;  %v65_v10 = vld [vmem:[%s3817_s1 + $0x108] sm:$0xff]  ;;  %2321 = vmatprep.subr.bf16.mxu0 %v2320_v3  ;;  %v34_v14 = vld [vmem:[%s3817_s1 + $0x10] sm:$0xff]  ;;  %v2324_v16 = vpack.c.bf16 %v51_v13, %v50_v11  ;;  %v172_v63 = vunpack.c.0.s8 %v171_v48 }
   0x5   :  { %v2354_v12 = vpack.c.bf16 %v65_v10, %v64_v9  ;;  %v35_v15 = vld [vmem:[%s3817_s1 + $0x18] sm:$0xff]  ;;  %2323 = vmatpush3.bf16.msra.mxu0 %v2322_v7  ;;  %v82_v18 = vld [vmem:[%s3817_s1 + $0x190] sm:$0xff]  ;;  %v52_v23 = vld [vmem:[%s3817_s1 + $0xa0] sm:$0xff] }
   0x6   :  { %2353 = vmatprep.subr.bf16.mxu1 %v2352_v8  ;;  %v2326_v17 = vpack.c.bf16 %v35_v15, %v34_v14  ;;  %v83_v19 = vld [vmem:[%s3817_s1 + $0x198] sm:$0xff]  ;;  %v66_v20 = vld [vmem:[%s3817_s1 + $0x110] sm:$0xff]  ;;  %v53_v24 = vld [vmem:[%s3817_s1 + $0xa8] sm:$0xff]  ;;  %2325 = vmatprep.subr.bf16.mxu0 %v2324_v16  ;;  %v2799_v13 = vsub.s32 %v172_v63, %v2772_v0 }
   0x7   :  { %2355 = vmatpush3.bf16.msra.mxu1 %v2354_v12  ;;  %v2356_v21 = vpack.c.bf16 %v83_v19, %v82_v18  ;;  %v67_v22 = vld [vmem:[%s3817_s1 + $0x118] sm:$0xff]  ;;  %v2328_v26 = vpack.c.bf16 %v53_v24, %v52_v23  ;;  %v36_v27 = vld [vmem:[%s3817_s1 + $0x20] sm:$0xff]  ;;  %v37_v28 = vld [vmem:[%s3817_s1 + $0x28] sm:$0xff] }
   0x8   :  { %v2358_v25 = vpack.c.bf16 %v67_v22, %v66_v20  ;;  %v84_v29 = vld [vmem:[%s3817_s1 + $0x1a0] sm:$0xff]  ;;  %v85_v30 = vld [vmem:[%s3817_s1 + $0x1a8] sm:$0xff]  ;;  %v2330_v33 = vpack.c.bf16 %v37_v28, %v36_v27  ;;  %v54_v35 = vld [vmem:[%s3817_s1 + $0xb0] sm:$0xff] }
   0x9   :  { %2357 = vmatprep.subr.bf16.mxu1 %v2356_v21  ;;  %v68_v31 = vld [vmem:[%s3817_s1 + $0x120] sm:$0xff]  ;;  %v69_v32 = vld [vmem:[%s3817_s1 + $0x128] sm:$0xff]  ;;  %2327 = vmatpush3.bf16.msra.mxu0 %v2326_v17  ;;  %v2360_v34 = vpack.c.bf16 %v85_v30, %v84_v29  ;;  %v55_v36 = vld [vmem:[%s3817_s1 + $0xb8] sm:$0xff] }
   0xa   :  { %v38_v37 = vld [vmem:[%s3817_s1 + $0x30] sm:$0xff]  ;;  %2329 = vmatprep.subr.bf16.mxu0 %v2328_v26  ;;  %v2362_v38 = vpack.c.bf16 %v69_v32, %v68_v31  ;;  %v2332_v39 = vpack.c.bf16 %v55_v36, %v54_v35  ;;  %v39_v40 = vld [vmem:[%s3817_s1 + $0x38] sm:$0xff]  ;;  %v56_v46 = vld [vmem:[%s3817_s1 + $0xc0] sm:$0xff] }
   0xb   :  { %2359 = vmatpush3.bf16.msra.mxu1 %v2358_v25  ;;  %v86_v41 = vld [vmem:[%s3817_s1 + $0x1b0] sm:$0xff]  ;;  %v87_v42 = vld [vmem:[%s3817_s1 + $0x1b8] sm:$0xff]  ;;  %v57_v50 = vld [vmem:[%s3817_s1 + $0xc8] sm:$0xff]  ;;  %v2334_v51 = vpack.c.bf16 %v39_v40, %v38_v37 }
   0xc   :  { %2361 = vmatprep.subr.bf16.mxu1 %v2360_v34  ;;  %v2364_v43 = vpack.c.bf16 %v87_v42, %v86_v41  ;;  %v70_v44 = vld [vmem:[%s3817_s1 + $0x130] sm:$0xff]  ;;  %v71_v45 = vld [vmem:[%s3817_s1 + $0x138] sm:$0xff]  ;;  %v88_v52 = vld [vmem:[%s3817_s1 + $0x1c0] sm:$0xff]  ;;  %v2336_v55 = vpack.c.bf16 %v57_v50, %v56_v46 }
   0xd   :  { %2331 = vmatpush3.bf16.msra.mxu0 %v2330_v33  ;;  %v89_v53 = vld [vmem:[%s3817_s1 + $0x1c8] sm:$0xff]  ;;  %v2366_v54 = vpack.c.bf16 %v71_v45, %v70_v44  ;;  %v40_v56 = vld [vmem:[%s3817_s1 + $0x40] sm:$0xff]  ;;  %v58_v61 = vld [vmem:[%s3817_s1 + $0xd0] sm:$0xff] }
   0xe   :  { %2333 = vmatprep.subr.bf16.mxu0 %v2332_v39  ;;  %v41_v57 = vld [vmem:[%s3817_s1 + $0x48] sm:$0xff]  ;;  %v72_v58 = vld [vmem:[%s3817_s1 + $0x140] sm:$0xff]  ;;  %v2368_v59 = vpack.c.bf16 %v89_v53, %v88_v52  ;;  %v59_v62 = vld [vmem:[%s3817_s1 + $0xd8] sm:$0xff] }
   0xf   :  { %2363 = vmatpush3.bf16.msra.mxu1 %v2362_v38  ;;  %v73_v60 = vld [vmem:[%s3817_s1 + $0x148] sm:$0xff]  ;;  %v90_v1 = vld [vmem:[%s3817_s1 + $0x1d0] sm:$0xff]  ;;  %v91_v2 = vld [vmem:[%s3817_s1 + $0x1d8] sm:$0xff]  ;;  %v2338_v3 = vpack.c.bf16 %v41_v57, %v40_v56  ;;  %v2340_v5 = vpack.c.bf16 %v59_v62, %v58_v61 }
  0x10   :  { %2365 = vmatprep.subr.bf16.mxu1 %v2364_v43  ;;  %v2370_v4 = vpack.c.bf16 %v73_v60, %v72_v58  ;;  %v42_v6 = vld [vmem:[%s3817_s1 + $0x50] sm:$0xff]  ;;  %v43_v7 = vld [vmem:[%s3817_s1 + $0x58] sm:$0xff]  ;;  %v2372_v9 = vpack.c.bf16 %v91_v2, %v90_v1  ;;  %v60_v11 = vld [vmem:[%s3817_s1 + $0xe0] sm:$0xff] }
  0x11   :  { %2335 = vmatpush3.bf16.msra.mxu0 %v2334_v51  ;;  %v74_v8 = vld [vmem:[%s3817_s1 + $0x150] sm:$0xff]  ;;  %v75_v10 = vld [vmem:[%s3817_s1 + $0x158] sm:$0xff]  ;;  %v61_v12 = vld [vmem:[%s3817_s1 + $0xe8] sm:$0xff]  ;;  %v2342_v16 = vpack.c.bf16 %v43_v7, %v42_v6 }
  0x12   :  { %2337 = vmatprep.subr.bf16.mxu0 %v2336_v55  ;;  %v92_v14 = vld [vmem:[%s3817_s1 + $0x1e0] sm:$0xff]  ;;  %v93_v15 = vld [vmem:[%s3817_s1 + $0x1e8] sm:$0xff]  ;;  %v2374_v18 = vpack.c.bf16 %v75_v10, %v74_v8  ;;  %v2344_v19 = vpack.c.bf16 %v61_v12, %v60_v11  ;;  %v62_v25 = vld [vmem:[%s3817_s1 + $0xf0] sm:$0xff] }
  0x13   :  { %2367 = vmatpush3.bf16.msra.mxu1 %v2366_v54  ;;  %v44_v17 = vld [vmem:[%s3817_s1 + $0x60] sm:$0xff]  ;;  %v45_v20 = vld [vmem:[%s3817_s1 + $0x68] sm:$0xff]  ;;  %v2376_v23 = vpack.c.bf16 %v93_v15, %v92_v14  ;;  %v63_v26 = vld [vmem:[%s3817_s1 + $0xf8] sm:$0xff] }
  0x14   :  { %2369 = vmatprep.subr.bf16.mxu1 %v2368_v59  ;;  %v76_v21 = vld [vmem:[%s3817_s1 + $0x160] sm:$0xff]  ;;  %v77_v24 = vld [vmem:[%s3817_s1 + $0x168] sm:$0xff]  ;;  %v94_v29 = vld [vmem:[%s3817_s1 + $0x1f0] sm:$0xff]  ;;  %v2346_v31 = vpack.c.bf16 %v45_v20, %v44_v17  ;;  %v2348_v35 = vpack.c.bf16 %v63_v26, %v62_v25 }
  0x15   :  { %2339 = vmatpush3.bf16.msra.mxu0 %v2338_v3  ;;  %v30_v22 = vld [vmem:[%s3816_s0] sm:$0xff]  ;;  %v95_v30 = vld [vmem:[%s3817_s1 + $0x1f8] sm:$0xff]  ;;  %v2378_v34 = vpack.c.bf16 %v77_v24, %v76_v21  ;;  %v46_v36 = vld [vmem:[%s3817_s1 + $0x70] sm:$0xff] }
  0x16   :  { %2341 = vmatprep.subr.bf16.mxu0 %v2340_v5  ;;  %v176_v27 = vrot.slane %v30_v22, %v2799_v13  ;;  %v169_v28 = vcombine.high %v30_v22, %v30_v22  ;;  %v47_v37 = vld [vmem:[%s3817_s1 + $0x78] sm:$0xff]  ;;  %v78_v38 = vld [vmem:[%s3817_s1 + $0x170] sm:$0xff]  ;;  %v2380_v39 = vpack.c.bf16 %v95_v30, %v94_v29  ;;  %v112_v41 = vld [vmem:[%s3817_s1 + $0x280] sm:$0xff] }
  0x17   :  { %2371 = vmatpush3.bf16.msra.mxu1 %v2370_v4  ;;  %v79_v40 = vld [vmem:[%s3817_s1 + $0x178] sm:$0xff]  ;;  %v113_v42 = vld [vmem:[%s3817_s1 + $0x288] sm:$0xff]  ;;  %v144_v44 = vld [vmem:[%s3817_s1 + $0x380] sm:$0xff]  ;;  %v2350_v46 = vpack.c.bf16 %v47_v37, %v46_v36 }
  0x18   :  { %2373 = vmatprep.subr.bf16.mxu1 %v2372_v9  ;;  %v184_v32 = vcombine.high %v176_v27, %v176_v27  ;;  %v183_v33 = vrot.slane %v169_v28, %v2799_v13  ;;  %v145_v45 = vld [vmem:[%s3817_s1 + $0x388] sm:$0xff]  ;;  %v2382_v47 = vpack.c.bf16 %v79_v40, %v78_v38  ;;  %v2384_v48 = vpack.c.bf16 %v113_v42, %v112_v41  ;;  %v96_v49 = vld [vmem:[%s3817_s1 + $0x200] sm:$0xff]  ;;  %v114_v54 = vld [vmem:[%s3817_s1 + $0x290] sm:$0xff] }
  0x19   :  { %2343 = vmatpush3.bf16.msra.mxu0 %v2342_v16  ;;  %v97_v50 = vld [vmem:[%s3817_s1 + $0x208] sm:$0xff]  ;;  %v128_v51 = vld [vmem:[%s3817_s1 + $0x300] sm:$0xff]  ;;  %v2416_v52 = vpack.c.bf16 %v145_v45, %v144_v44  ;;  %v115_v55 = vld [vmem:[%s3817_s1 + $0x298] sm:$0xff] }
  0x1a   :  { %2345 = vmatprep.subr.bf16.mxu0 %v2344_v19  ;;  %275 = vmatprep.mubr.f32.mxu0 %v184_v32  ;;  %v185_v43 = vcombine.high %v183_v33, %v183_v33  ;;  %v129_v53 = vld [vmem:[%s3817_s1 + $0x308] sm:$0xff]  ;;  %v146_v56 = vld [vmem:[%s3817_s1 + $0x390] sm:$0xff]  ;;  %v147_v57 = vld [vmem:[%s3817_s1 + $0x398] sm:$0xff]  ;;  %v2386_v58 = vpack.c.bf16 %v97_v50, %v96_v49  ;;  %v2388_v60 = vpack.c.bf16 %v115_v55, %v114_v54 }
  0x1b   :  { %2375 = vmatpush3.bf16.msra.mxu1 %v2374_v18  ;;  %v2418_v59 = vpack.c.bf16 %v129_v53, %v128_v51  ;;  %v98_v61 = vld [vmem:[%s3817_s1 + $0x210] sm:$0xff]  ;;  %v99_v62 = vld [vmem:[%s3817_s1 + $0x218] sm:$0xff]  ;;  %v2420_v1 = vpack.c.bf16 %v147_v57, %v146_v56  ;;  %v116_v3 = vld [vmem:[%s3817_s1 + $0x2a0] sm:$0xff] }
  0x1c   :  { %2377 = vmatprep.subr.bf16.mxu1 %v2376_v23  ;;  %345 = vmatprep.mubr.f32.mxu1 %v185_v43  ;;  %v130_v63 = vld [vmem:[%s3817_s1 + $0x310] sm:$0xff]  ;;  %v131_v2 = vld [vmem:[%s3817_s1 + $0x318] sm:$0xff]  ;;  %v117_v4 = vld [vmem:[%s3817_s1 + $0x2a8] sm:$0xff]  ;;  %v2390_v7 = vpack.c.bf16 %v99_v62, %v98_v61 }
  0x1d   :  { %2347 = vmatpush3.bf16.msra.mxu0 %v2346_v31  ;;  %v148_v5 = vld [vmem:[%s3817_s1 + $0x3a0] sm:$0xff]  ;;  %v149_v6 = vld [vmem:[%s3817_s1 + $0x3a8] sm:$0xff]  ;;  %v2422_v8 = vpack.c.bf16 %v131_v2, %v130_v63  ;;  %v2392_v9 = vpack.c.bf16 %v117_v4, %v116_v3  ;;  %v118_v16 = vld [vmem:[%s3817_s1 + $0x2b0] sm:$0xff] }
  0x1e   :  { %2349 = vmatprep.subr.bf16.mxu0 %v2348_v35  ;;  %v100_v10 = vld [vmem:[%s3817_s1 + $0x220] sm:$0xff]  ;;  %v101_v11 = vld [vmem:[%s3817_s1 + $0x228] sm:$0xff]  ;;  %v2424_v14 = vpack.c.bf16 %v149_v6, %v148_v5  ;;  %v119_v17 = vld [vmem:[%s3817_s1 + $0x2b8] sm:$0xff] }
  0x1f   :  { %2379 = vmatpush3.bf16.msra.mxu1 %v2378_v34  ;;  %v132_v12 = vld [vmem:[%s3817_s1 + $0x320] sm:$0xff]  ;;  %v133_v15 = vld [vmem:[%s3817_s1 + $0x328] sm:$0xff]  ;;  %v150_v18 = vld [vmem:[%s3817_s1 + $0x3b0] sm:$0xff]  ;;  %v2394_v20 = vpack.c.bf16 %v101_v11, %v100_v10  ;;  %v2396_v23 = vpack.c.bf16 %v119_v17, %v118_v16 }
  0x20   :  { %2381 = vmatprep.subr.bf16.mxu1 %v2380_v39  ;;  %v151_v19 = vld [vmem:[%s3817_s1 + $0x3b8] sm:$0xff]  ;;  %v102_v21 = vld [vmem:[%s3817_s1 + $0x230] sm:$0xff]  ;;  %v2426_v22 = vpack.c.bf16 %v133_v15, %v132_v12  ;;  %v120_v28 = vld [vmem:[%s3817_s1 + $0x2c0] sm:$0xff] }
  0x21   :  { %2351 = vmatpush3.bf16.msra.mxu0 %v2350_v46  ;;  %v103_v24 = vld [vmem:[%s3817_s1 + $0x238] sm:$0xff]  ;;  %v134_v25 = vld [vmem:[%s3817_s1 + $0x330] sm:$0xff]  ;;  %v121_v29 = vld [vmem:[%s3817_s1 + $0x2c8] sm:$0xff] }
  0x22   :  { %2385 = vmatprep.subr.bf16.mxu0 %v2384_v48  ;;  %v135_v26 = vld [vmem:[%s3817_s1 + $0x338] sm:$0xff]  ;;  %v152_v30 = vld [vmem:[%s3817_s1 + $0x3c0] sm:$0xff]  ;;  %v153_v31 = vld [vmem:[%s3817_s1 + $0x3c8] sm:$0xff] }
  0x23   :  { %2383 = vmatpush3.bf16.msra.mxu1 %v2382_v47  ;;  %v31_v32 = vld [vmem:[%s3816_s0 + $0x8] sm:$0xff] }
  0x24   :  { %2417 = vmatprep.subr.bf16.mxu1 %v2416_v52  ;;  %276 = vmatmul.mubr.f32.vlgmr.msra.gmra.mrb[0].mxu0 %v176_v27  ;;  %v2428_v27 = vpack.c.bf16 %v151_v19, %v150_v18 }
  0x25   :  { %2387 = vmatpush3.bf16.msra.mxu0 %v2386_v58 }
  0x26   :  { %346 = vmatmul.mubr.f32.vlgmr.msra.gmra.mrb[0].mxu1 %v183_v33  ;;  %2389 = vmatprep.subr.bf16.mxu0 %v2388_v60 }
  0x27   :  { %2419 = vmatpush3.bf16.msra.mxu1 %v2418_v59 }
  0x28   :  { %2421 = vmatprep.subr.bf16.mxu1 %v2420_v1 }
  0x29   :  { %2391 = vmatpush3.bf16.msra.mxu0 %v2390_v7 }
  0x2a   :  { %2393 = vmatprep.subr.bf16.mxu0 %v2392_v9 }
  0x2b   :  { %2423 = vmatpush3.bf16.msra.mxu1 %v2422_v8 }
  0x2c   :  { %2425 = vmatprep.subr.bf16.mxu1 %v2424_v14 }
  0x2d   :  { %17 = vsyncpa [#allocation8], 0  ;;  %2395 = vmatpush3.bf16.msra.mxu0 %v2394_v20  ;;  %v2398_v33 = vpack.c.bf16 %v103_v24, %v102_v21  ;;  %v2960_v34 = vrot.slane %v31_v32, %v2799_v13  ;;  %v186_v35 = vcombine.high %v31_v32, %v31_v32  ;;  %v2430_v36 = vpack.c.bf16 %v135_v26, %v134_v25  ;;  %v104_v38 = vld [vmem:[%s3817_s1 + $0x240] sm:$0xff]  ;;  %v105_v39 = vld [vmem:[%s3817_s1 + $0x248] sm:$0xff] }
  0x2e   :  { %2397 = vmatprep.subr.bf16.mxu0 %v2396_v23  ;;  %v2400_v37 = vpack.c.bf16 %v121_v29, %v120_v28  ;;  %v136_v40 = vld [vmem:[%s3817_s1 + $0x340] sm:$0xff]  ;;  %v2432_v41 = vpack.c.bf16 %v153_v31, %v152_v30  ;;  %v137_v42 = vld [vmem:[%s3817_s1 + $0x348] sm:$0xff]  ;;  %v122_v43 = vld [vmem:[%s3817_s1 + $0x2d0] sm:$0xff]  ;;  %v2402_v49 = vpack.c.bf16 %v105_v39, %v104_v38  ;;  %v2589_v29 = vmov 0.0  }
  0x2f   :  { %2427 = vmatpush3.bf16.msra.mxu1 %v2426_v22  ;;  %v123_v44 = vld [vmem:[%s3817_s1 + $0x2d8] sm:$0xff]  ;;  %v201_v45 = vcombine.high %v2960_v34, %v2960_v34  ;;  %v200_v46 = vrot.slane %v186_v35, %v2799_v13  ;;  %v154_v47 = vld [vmem:[%s3817_s1 + $0x3d0] sm:$0xff]  ;;  %v2434_v51 = vpack.c.bf16 %v137_v42, %v136_v40  ;;  %v124_v58 = vld [vmem:[%s3817_s1 + $0x2e0] sm:$0xff]  ;;  %vm548_vm8 = vcmask 254976  }
  0x30   :  { %2429 = vmatprep.subr.bf16.mxu1 %v2428_v27  ;;  %v155_v48 = vld [vmem:[%s3817_s1 + $0x3d8] sm:$0xff]  ;;  %v2404_v52 = vpack.c.bf16 %v123_v44, %v122_v43  ;;  %v106_v53 = vld [vmem:[%s3817_s1 + $0x250] sm:$0xff]  ;;  %v125_v59 = vld [vmem:[%s3817_s1 + $0x2e8] sm:$0xff]  ;;  %vm638_vm11 = vcmask 261120  }
  0x31   :  { %2399 = vmatpush3.bf16.msra.mxu0 %v2398_v33  ;;  %415 = vmatprep.mubr.f32.mxu0 %v201_v45  ;;  %v202_v50 = vcombine.high %v200_v46, %v200_v46  ;;  %v107_v54 = vld [vmem:[%s3817_s1 + $0x258] sm:$0xff]  ;;  %v138_v55 = vld [vmem:[%s3817_s1 + $0x350] sm:$0xff]  ;;  %v2436_v56 = vpack.c.bf16 %v155_v48, %v154_v47  ;;  %v156_v60 = vld [vmem:[%s3817_s1 + $0x3e0] sm:$0xff]  ;;  %v2408_v1 = vpack.c.bf16 %v125_v59, %v124_v58 }
  0x32   :  { %2401 = vmatprep.subr.bf16.mxu0 %v2400_v37  ;;  %v139_v57 = vld [vmem:[%s3817_s1 + $0x358] sm:$0xff]  ;;  %v157_v61 = vld [vmem:[%s3817_s1 + $0x3e8] sm:$0xff]  ;;  %v2406_v62 = vpack.c.bf16 %v107_v54, %v106_v53  ;;  %v108_v2 = vld [vmem:[%s3817_s1 + $0x260] sm:$0xff] }
  0x33   :  { %2431 = vmatpush3.bf16.msra.mxu1 %v2430_v36  ;;  %485 = vmatprep.mubr.f32.mxu1 %v202_v50  ;;  %v2438_v63 = vpack.c.bf16 %v139_v57, %v138_v55  ;;  %v109_v3 = vld [vmem:[%s3817_s1 + $0x268] sm:$0xff]  ;;  %v140_v4 = vld [vmem:[%s3817_s1 + $0x360] sm:$0xff]  ;;  %v2440_v5 = vpack.c.bf16 %v157_v61, %v156_v60  ;;  %v126_v7 = vld [vmem:[%s3817_s1 + $0x2f0] sm:$0xff] }
  0x34   :  { %2433 = vmatprep.subr.bf16.mxu1 %v2432_v41  ;;  %v141_v6 = vld [vmem:[%s3817_s1 + $0x368] sm:$0xff]  ;;  %v127_v8 = vld [vmem:[%s3817_s1 + $0x2f8] sm:$0xff]  ;;  %v158_v9 = vld [vmem:[%s3817_s1 + $0x3f0] sm:$0xff]  ;;  %v2410_v11 = vpack.c.bf16 %v109_v3, %v108_v2 }
  0x35   :  { %2403 = vmatpush3.bf16.msra.mxu0 %v2402_v49  ;;  %v159_v10 = vld [vmem:[%s3817_s1 + $0x3f8] sm:$0xff]  ;;  %v2442_v12 = vpack.c.bf16 %v141_v6, %v140_v4  ;;  %v2412_v14 = vpack.c.bf16 %v127_v8, %v126_v7  ;;  %v110_v15 = vld [vmem:[%s3817_s1 + $0x270] sm:$0xff]  ;;  %v565_v22 = vld [vmem:[%s3819_s3 + $0x8] sm:$0xff] }
  0x36   :  { %2405 = vmatprep.subr.bf16.mxu0 %v2404_v52  ;;  %v111_v16 = vld [vmem:[%s3817_s1 + $0x278] sm:$0xff]  ;;  %v2444_v17 = vpack.c.bf16 %v159_v10, %v158_v9  ;;  %v142_v18 = vld [vmem:[%s3817_s1 + $0x370] sm:$0xff]  ;;  %v573_v23 = vld [vmem:[%s3819_s3 + $0x48] sm:$0xff] }
  0x37   :  { %2435 = vmatpush3.bf16.msra.mxu1 %v2434_v51  ;;  %v143_v19 = vld [vmem:[%s3817_s1 + $0x378] sm:$0xff]  ;;  %v2414_v20 = vpack.c.bf16 %v111_v16, %v110_v15  ;;  %v2448_v25 = vpack.c.bf16 %v573_v23, %v565_v22  ;;  %v564_v27 = vld [vmem:[%s3819_s3] sm:$0xff]  ;;  %v566_v32 = vld [vmem:[%s3819_s3 + $0x10] sm:$0xff] }
  0x38   :  { %2437 = vmatprep.subr.bf16.mxu1 %v2436_v56  ;;  %v2446_v21 = vpack.c.bf16 %v143_v19, %v142_v18  ;;  %v567_v24 = vld [vmem:[%s3819_s3 + $0x18] sm:$0xff]  ;;  %v572_v28 = vld [vmem:[%s3819_s3 + $0x40] sm:$0xff]  ;;  %v574_v33 = vld [vmem:[%s3819_s3 + $0x50] sm:$0xff] }
  0x39   :  { %2407 = vmatpush3.bf16.msra.mxu0 %v2406_v62  ;;  %v575_v26 = vld [vmem:[%s3819_s3 + $0x58] sm:$0xff]  ;;  %v2450_v31 = vpack.c.bf16 %v572_v28, %v564_v27  ;;  %v2458_v35 = vpack.c.bf16 %v574_v33, %v566_v32  ;;  %v589_v36 = vld [vmem:[%s3819_s3 + $0xc8] sm:$0xff]  ;;  %v580_v41 = vld [vmem:[%s3819_s3 + $0x80] sm:$0xff] }
  0x3a   :  { %2409 = vmatprep.subr.bf16.mxu0 %v2408_v1  ;;  %v2456_v30 = vpack.c.bf16 %v575_v26, %v567_v24  ;;  %v583_v37 = vld [vmem:[%s3819_s3 + $0x98] sm:$0xff]  ;;  %v588_v42 = vld [vmem:[%s3819_s3 + $0xc0] sm:$0xff]  ;;  %v582_v43 = vld [vmem:[%s3819_s3 + $0x90] sm:$0xff] }
  0x3b   :  { %2439 = vmatpush3.bf16.msra.mxu1 %v2438_v63  ;;  %v591_v38 = vld [vmem:[%s3819_s3 + $0xd8] sm:$0xff]  ;;  %v2454_v44 = vpack.c.bf16 %v588_v42, %v580_v41  ;;  %v590_v45 = vld [vmem:[%s3819_s3 + $0xd0] sm:$0xff]  ;;  %v577_v47 = vld [vmem:[%s3819_s3 + $0x68] sm:$0xff] }
  0x3c   :  { %2441 = vmatprep.subr.bf16.mxu1 %v2440_v5  ;;  %v2460_v40 = vpack.c.bf16 %v591_v38, %v583_v37  ;;  %v2462_v48 = vpack.c.bf16 %v590_v45, %v582_v43  ;;  %v571_v50 = vld [vmem:[%s3819_s3 + $0x38] sm:$0xff]  ;;  %v2103_v54 = vld [vmem:[%s3818_s2] ss:$0 sm:$0xff] }
  0x3d   :  { %2411 = vmatpush3.bf16.msra.mxu0 %v2410_v11  ;;  %v579_v51 = vld [vmem:[%s3819_s3 + $0x78] sm:$0xff] }
  0x3e   :  { %2413 = vmatprep.subr.bf16.mxu0 %v2412_v14  ;;  %v2472_v52 = vpack.c.bf16 %v579_v51, %v571_v50 }
  0x3f   :  { %2443 = vmatpush3.bf16.msra.mxu1 %v2442_v12 }
  0x40   :  { %2445 = vmatprep.subr.bf16.mxu1 %v2444_v17 }
  0x41   :  { %2415 = vmatpush3.bf16.msra.mxu0 %v2414_v20 }
  0x42   :  { %2449 = vmatprep.subr.bf16.mxu0 %v2448_v25 }
  0x43   :  { %2447 = vmatpush3.bf16.msra.mxu1 %v2446_v21 }
  0x44   :  { %416 = vmatmul.mubr.f32.vlgmr.msra.gmra.mrb[2].mxu0 %v2960_v34  ;;  %v581_v34 = vld [vmem:[%s3819_s3 + $0x88] sm:$0xff]  ;;  %2457 = vmatprep.subr.bf16.mxu1 %v2456_v30 }
  0x45   :  { %706 = vmatprep.mubr.f32.mxu0 %v2589_v29  ;;  %2451 = vmatpush1.bf16.msra.mxu0 %v2450_v31  ;;  %v2452_v39 = vpack.c.bf16 %v589_v36, %v581_v34 }
  0x46   :  { %486 = vmatmul.mubr.f32.vlgmr.msra.gmra.mrb[2].mxu1 %v200_v46  ;;  %v569_v46 = vld [vmem:[%s3819_s3 + $0x28] sm:$0xff] }
  0x47   :  { %777 = vmatprep.mubr.f32.mxu1 %v2589_v29  ;;  %2459 = vmatpush1.bf16.msra.mxu1 %v2458_v35  ;;  %v2464_v49 = vpack.c.bf16 %v577_v47, %v569_v46 }
  0x48   :  { %2453 = vmatprep.subr.bf16.mxu0 %v2452_v39  ;;  %2461 = vmatprep.subr.bf16.mxu1 %v2460_v40 }
  0x49   :  { %2455 = vmatpush1.bf16.msra.mxu0 %v2454_v44 }
  0x4a   :  { %2465 = vmatprep.subr.bf16.mxu0 %v2464_v49 }
  0x4b   :  { %2463 = vmatpush1.bf16.msra.mxu1 %v2462_v48 }
  0x4c   :  { %2473 = vmatprep.subr.bf16.mxu1 %v2472_v52 }
  0xf7   :  { %v2212_v53 = vpop.f32.mrb[0].mxu0 }
  0xf8   :  { %v2213_v55 = vpop.f32.mrb[1].mxu0 }
  0xf9   :  { %v2247_v56 = vpop.f32.mrb[0].mxu1  ;;  %v2214_v57 = vadd.f32 %v2213_v55, %v2212_v53  ;;  %v568_v55 = vld [vmem:[%s3819_s3 + $0x20] sm:$0xff] }
  0xfa   :  { %v2248_v58 = vpop.f32.mrb[1].mxu1 }
  0xfb   :  { %v2249_v59 = vadd.f32 %v2248_v58, %v2247_v56  ;;  %v278_v60 = vadd.f32 %v2214_v57, %v2103_v54  ;;  %v561_v54 = vld [vmem:[%s3821_s5] sm:$0x3]  ;;  %v570_v58 = vld [vmem:[%s3819_s3 + $0x30] sm:$0xff] }
  0xfc   :  { %v576_v56 = vld [vmem:[%s3819_s3 + $0x60] sm:$0xff] }
  0xfd   :  { %v348_v61 = vadd.f32 %v2249_v59, %v278_v60  ;;  %v578_v59 = vld [vmem:[%s3819_s3 + $0x70] sm:$0xff]  ;;  %v585_v60 = vld [vmem:[%s3819_s3 + $0xa8] sm:$0xff] }
 0x117   :  { %v2282_v62 = vpop.f32.mrb[2].mxu0 }
 0x118   :  { %v2283_v63 = vpop.f32.mrb[3].mxu0 }
 0x119   :  { %v2317_v1 = vpop.f32.mrb[2].mxu1  ;;  %v2284_v2 = vadd.f32 %v2283_v63, %v2282_v62  ;;  %v593_v62 = vld [vmem:[%s3819_s3 + $0xe8] sm:$0xff]  ;;  %v587_v63 = vld [vmem:[%s3819_s3 + $0xb8] sm:$0xff] }
 0x11a   :  { %v2318_v3 = vpop.f32.mrb[3].mxu1 }
 0x11b   :  { %v2319_v4 = vadd.f32 %v2318_v3, %v2317_v1  ;;  %v418_v5 = vadd.f32 %v2284_v2, %v348_v61  ;;  %v595_v1 = vld [vmem:[%s3819_s3 + $0xf8] sm:$0xff]  ;;  %v2466_v3 = vpack.c.bf16 %v576_v56, %v568_v55 }
 0x11d   :  { %v488_v6 = vadd.f32 %v2319_v4, %v418_v5  ;;  %v2474_v4 = vpack.c.bf16 %v578_v59, %v570_v58  ;;  %v584_v5 = vld [vmem:[%s3819_s3 + $0xa0] sm:$0xff] }
 0x11f   :  { %vm492_vm0 = vcmp.gt.f32.partialorder %v488_v6, 1.0  ;;  %v496_v7 = vmul.f32 0.9, %v488_v6 }
 0x120   :  { %v2104_v9 = vsel %vm492_vm0, 1.0, %v2589_v29 }
 0x121   :  { %v497_v8 = vadd.f32 %v496_v7, %v488_v6  ;;  %v2468_v7 = vpack.c.bf16 %v593_v62, %v585_v60 }
 0x123   :  { %v498_v10 = vsub.f32 %v497_v8, %v2104_v9  ;;  %v2476_v8 = vpack.c.bf16 %v595_v1, %v587_v63 }
 0x125   :  { %vm499_vm1 = vcmp.gt.f32.partialorder %v498_v10, 1.0  ;;  %v503_v11 = vmul.f32 0.9, %v498_v10  ;;  %v586_v10 = vld [vmem:[%s3819_s3 + $0xb0] sm:$0xff] }
 0x126   :  { %v2105_v14 = vsel %vm499_vm1, 1.0, %v2589_v29 }
 0x127   :  { %v504_v12 = vadd.f32 %v503_v11, %v488_v6  ;;  %v502_v30 = vadd.f32 %v2105_v14, %v2104_v9  ;;  %v592_v9 = vld [vmem:[%s3819_s3 + $0xe0] sm:$0xff]  ;;  %v594_v11 = vld [vmem:[%s3819_s3 + $0xf0] sm:$0xff] }
 0x129   :  { %v505_v15 = vsub.f32 %v504_v12, %v2105_v14  ;;  %v2470_v12 = vpack.c.bf16 %v592_v9, %v584_v5  ;;  %v2478_v14 = vpack.c.bf16 %v594_v11, %v586_v10 }
 0x12b   :  { %vm506_vm2 = vcmp.gt.f32.partialorder %v505_v15, 1.0  ;;  %v510_v16 = vmul.f32 0.9, %v505_v15  ;;  %v600_v15 = vsub.s32 0, %v2772_v0 }
 0x12c   :  { %v2106_v18 = vsel %vm506_vm2, 1.0, %v2589_v29 }
 0x12d   :  { %v511_v17 = vadd.f32 %v510_v16, %v488_v6  ;;  %v509_v33 = vadd.f32 %v2106_v18, %v502_v30  ;;  %v608_v16 = vsub.s32 2, %v2772_v0 }
 0x12f   :  { %v512_v19 = vsub.f32 %v511_v17, %v2106_v18  ;;  %v3173_v17 = vld [vmem:[%s3820_s4] sm:$0xff]  ;;  %v604_v18 = vsub.s32 1, %v2772_v0  ;;  %s2590_s4 = smov [#allocation7]  }
 0x130   :  { %s2084_s11 = sshll.u32 %s2590_s4, 4  ;;  %s2085_s11 = int_to_ptr.vmem [resolvable:$true] %s2084_s11 }
 0x131   :  { %vm513_vm3 = vcmp.gt.f32.partialorder %v512_v19, 1.0  ;;  %v517_v20 = vmul.f32 0.9, %v512_v19  ;;  %v612_v19 = vsub.s32 3, %v2772_v0  ;;  %s2494_s12 = scalar_lea.vmem %s2085_s11, 32  ;;  %p2499_p1 = scmp.lt.s32.totalorder %s2085_s11, %s2085_s11 }
 0x132   :  { %v2107_v22 = vsel %vm513_vm3, 1.0, %v2589_v29  ;;  %p2495_p0 = scmp.ne.s32.totalorder %s2085_s11, %s2494_s12  ;;  %p2500_p2 = scmp.lt.s32.totalorder %s2494_s12, %s2494_s12 }
 0x133   :  { %v518_v21 = vadd.f32 %v517_v20, %v488_v6  ;;  %v516_v35 = vadd.f32 %v2107_v22, %v509_v33  ;;  %v601_v20 = vrot.slane %v3173_v17, %v600_v15  ;;  %v616_v33 = vsub.s32 4, %v2772_v0 }
 0x134   :  { %p2501_p3 = por %p2500_p2, %p2499_p1 }
 0x135   :  { %v519_v23 = vsub.f32 %v518_v21, %v2107_v22  ;;  %v609_v21 = vrot.slane %v3173_v17, %v608_v16  ;;  %v605_v22 = vrot.slane %v3173_v17, %v604_v18 }
 0x136   :  { %p2502_p4 = pnand %p2501_p3, %p2495_p0 }
 0x137   :  { %vm520_vm4 = vcmp.gt.f32.partialorder %v519_v23, 1.0  ;;  %v524_v24 = vmul.f32 0.9, %v519_v23  ;;  %v613_v23 = vrot.slane %v3173_v17, %v612_v19 }
 0x138   :  { %v2108_v26 = vsel %vm520_vm4, 1.0, %v2589_v29 }
 0x139   :  { %v525_v25 = vadd.f32 %v524_v24, %v488_v6  ;;  %v523_v37 = vadd.f32 %v2108_v26, %v516_v35 }
 0x13b   :  { %v526_v27 = vsub.f32 %v525_v25, %v2108_v26 }
 0x13d   :  { %vm527_vm5 = vcmp.gt.f32.partialorder %v526_v27, 1.0  ;;  %v531_v28 = vmul.f32 0.9, %v526_v27 }
 0x13e   :  { %v2109_v32 = vsel %vm527_vm5, 1.0, %v2589_v29 }
 0x13f   :  { %v532_v31 = vadd.f32 %v531_v28, %v488_v6  ;;  %v530_v40 = vadd.f32 %v2109_v32, %v523_v37 }
 0x141   :  { %v533_v34 = vsub.f32 %v532_v31, %v2109_v32 }
 0x143   :  { %vm534_vm6 = vcmp.gt.f32.partialorder %v533_v34, 1.0  ;;  %v538_v36 = vmul.f32 0.9, %v533_v34 }
 0x144   :  { %v2110_v39 = vsel %vm534_vm6, 1.0, %v2589_v29 }
 0x145   :  { %v539_v38 = vadd.f32 %v538_v36, %v488_v6  ;;  %v537_v42 = vadd.f32 %v2110_v39, %v530_v40 }
 0x147   :  { %v540_v41 = vsub.f32 %v539_v38, %v2110_v39 }
 0x149   :  { %vm541_vm7 = vcmp.gt.f32.partialorder %v540_v41, 1.0 }
 0x14a   :  { %v2111_v43 = vsel %vm541_vm7, 1.0, %v2589_v29 }
 0x14b   :  { %v544_v44 = vadd.f32 %v2111_v43, %v537_v42 }
 0x14d   :  { %v545_v45 = vmul.f32 0.125, %v544_v44 }
 0x14f   :  { %v546_v46 = vmul.f32 %v545_v45, %v545_v45  ;;  %549 = vst.msk [vmem:[#allocation6] sm:$0x3] %vm548_vm8, %v545_v45 }
 0x151   :  { %v547_v47 = vsub.f32 %v545_v45, %v546_v46 }
 0x153   :  { %v551_v48 = vmul.f32 0.5, %v547_v47  ;;  %550 = vst.msk [vmem:[#allocation7] sm:$0x3] %vm548_vm8, %v547_v47 }
 0x155   :  { %v552_v49 = vmul.f32 1.442695, %v551_v48 }
 0x157   :  { %2490 = vpow2.f32 %v552_v49 }
 0x161   :  { %v2491_v50 = vpop.eup %2490 }
 0x162   :  { %2492 = vrsqrt.f32 %v2491_v50  ;;  %vm556_vm9 = vcmp.eq.f32.partialorder %v2491_v50, inf  ;;  %v559_v53 = vand.u32 2147483648, %v2491_v50  ;;  %vm558_vm10 = vcmp.eq.f32.partialorder %v2491_v50, 0.0 }
 0x16c   :  { %v2493_v51 = vpop.eup %2492 }
 0x16d   :  { %v555_v52 = vmul.f32 %v2493_v51, %v2491_v50 }
 0x16f   :  { %v557_v57 = vsel %vm556_vm9, %v2491_v50, %v555_v52 }
 0x170   :  { %v560_v61 = vsel %vm558_vm10, %v559_v53, %v557_v57 }
 0x171   :  { %v562_v2 = vmul.f32 %v561_v54, %v560_v61 }
 0x173   :  { %v563_v6 = vadd.f32 %v562_v2, %v545_v45 }
 0x175   :  { %2112 = vmatmul.mubr.msk.f32.vlgmr.msra.gmra.mrb[4].mxu0 %vm638_vm11, %v563_v6  ;;  %2113 = vmatmul.mubr.msk.f32.vlgmr.msra.gmra.mrb[4].mxu1 %vm638_vm11, %v563_v6 }
 0x176   :  { %2467 = vmatpush1.bf16.msra.mxu0 %v2466_v3  ;;  %2475 = vmatpush1.bf16.msra.mxu1 %v2474_v4 }
 0x177   :  { %2469 = vmatprep.subr.bf16.mxu0 %v2468_v7  ;;  %2477 = vmatprep.subr.bf16.mxu1 %v2476_v8 }
 0x178   :  { %848 = vmatprep.mubr.f32.mxu0 %v2589_v29  ;;  %919 = vmatprep.mubr.f32.mxu1 %v2589_v29 }
 0x17a   :  { %2471 = vmatpush1.bf16.msra.mxu0 %v2470_v12  ;;  %2479 = vmatpush1.bf16.msra.mxu1 %v2478_v14 }
 0x17d   :  { %2114 = vmatmul.mubr.msk.f32.vlgmr.msra.gmra.mrb[6].mxu0 %vm638_vm11, %v563_v6  ;;  %2115 = vmatmul.mubr.msk.f32.vlgmr.msra.gmra.mrb[6].mxu1 %vm638_vm11, %v563_v6 }
 0x248   :  { %v708_v24 = vpop.f32.mrb[4].mxu0  ;;  %v779_v25 = vpop.f32.mrb[4].mxu1 }
 0x249   :  { %v3181_v26 = vadd.f32 %v708_v24, %v601_v20  ;;  %v3183_v27 = vadd.f32 %v779_v25, %v609_v21  ;;  %v710_v28 = vpop.f32.mrb[5].mxu0  ;;  %v781_v30 = vpop.f32.mrb[5].mxu1 }
 0x24a   :  { %v3185_v31 = vadd.f32 %v710_v28, %v605_v22  ;;  %v3187_v32 = vadd.f32 %v781_v30, %v613_v23 }
 0x24b   :  { %vm934_vm12 = vcmp.gt.f32.partialorder %v3181_v26, 1.0  ;;  %v1050_v34 = vmul.f32 0.9, %v3181_v26  ;;  %vm936_vm13 = vcmp.gt.f32.partialorder %v3183_v27, 1.0  ;;  %v1052_v35 = vmul.f32 0.9, %v3183_v27 }
 0x24c   :  { %v2116_v36 = vsel %vm934_vm12, 1.0, %v2589_v29  ;;  %v2118_v37 = vsel %vm936_vm13, 1.0, %v2589_v29  ;;  %vm935_vm14 = vcmp.gt.f32.partialorder %v3185_v31, 1.0  ;;  %v1012_v38 = vcombine.low %v3181_v26, %v3185_v31 }
 0x24d   :  { %v1058_v39 = vadd.f32 %v1050_v34, %v3181_v26  ;;  %v1060_v40 = vadd.f32 %v1052_v35, %v3183_v27  ;;  %v2117_v41 = vsel %vm935_vm14, 1.0, %v2589_v29  ;;  %v1051_v42 = vmul.f32 0.9, %v3185_v31 }
 0x24e   :  { %v966_v43 = vcombine.low %v2116_v36, %v2117_v41  ;;  %v1020_v44 = vrot.slane %v1012_v38, %v2799_v13  ;;  %vm937_vm15 = vcmp.gt.f32.partialorder %v3187_v32, 1.0  ;;  %v1013_v45 = vcombine.low %v3183_v27, %v3187_v32 }
 0x24f   :  { %v1066_v46 = vsub.f32 %v1058_v39, %v2116_v36  ;;  %v3207_v47 = vsub.f32 %v1060_v40, %v2118_v37  ;;  %v1059_v48 = vadd.f32 %v1051_v42, %v3185_v31  ;;  %v2119_v49 = vsel %vm937_vm15, 1.0, %v2589_v29 }
 0x250   :  { %v974_v50 = vrot.slane %v966_v43, %v2799_v13  ;;  %v967_v51 = vcombine.low %v2118_v37, %v2119_v49  ;;  %v1027_v52 = vrot.slane %v1013_v45, %v2799_v13  ;;  %v1053_v53 = vmul.f32 0.9, %v3187_v32  ;;  %v3214_v54 = vpop.f32.mrb[6].mxu0  ;;  %v3216_v55 = vpop.f32.mrb[6].mxu1 }
 0x251   :  { %vm1074_vm0 = vcmp.gt.f32.partialorder %v1066_v46, 1.0  ;;  %v1192_v56 = vmul.f32 0.9, %v1066_v46  ;;  %vm1076_vm1 = vcmp.gt.f32.partialorder %v3207_v47, 1.0  ;;  %v1194_v57 = vmul.f32 0.9, %v3207_v47 }
 0x252   :  { %v2124_v58 = vsel %vm1074_vm0, 1.0, %v2589_v29  ;;  %v3222_v59 = vsel %vm1076_vm1, 1.0, %v2589_v29  ;;  %v1067_v60 = vsub.f32 %v1059_v48, %v2117_v41  ;;  %v981_v61 = vrot.slane %v967_v51, %v2799_v13  ;;  %v3225_v62 = vpop.f32.mrb[7].mxu0  ;;  %v3227_v63 = vpop.f32.mrb[7].mxu1 }
 0x253   :  { %v1200_v1 = vadd.f32 %v1192_v56, %v3181_v26  ;;  %v1202_v2 = vadd.f32 %v1194_v57, %v3183_v27  ;;  %v1028_v3 = vcombine.low %v1020_v44, %v1027_v52  ;;  %v1061_v4 = vadd.f32 %v1053_v53, %v3187_v32 }
 0x254   :  { %vm1075_vm2 = vcmp.gt.f32.partialorder %v1067_v60, 1.0  ;;  %v1153_v5 = vcombine.low %v1066_v46, %v1067_v60  ;;  %v1193_v6 = vmul.f32 0.9, %v1067_v60  ;;  %v982_v7 = vcombine.low %v974_v50, %v981_v61 }
 0x255   :  { %v3232_v8 = vsub.f32 %v1200_v1, %v2124_v58  ;;  %v3235_v9 = vsub.f32 %v1202_v2, %v3222_v59  ;;  %v2125_v10 = vsel %vm1075_vm2, 1.0, %v2589_v29  ;;  %1048 = vst [vmem:[#allocation4] sm:$0xff] %v1028_v3  ;;  %v1069_v11 = vsub.f32 %v1061_v4, %v2119_v49 }
 0x256   :  { %2505 = shalt.err (!%p2502_p4)
}
 0x257   :  { %s2506_s15 = scalar_lea.hbm %s3825_s9, 32 }
 0x258   :  { %p2507_p5 = scmp.ne.s32.totalorder %s3825_s9, %s2506_s15  ;;  %p2510_p6 = scmp.lt.u32.totalorder %s2506_s15, %s3825_s9 }
 0x25a   :  { %p2512_p7 = pnand %p2510_p6, %p2507_p5 }
 0x25c   :  { %2515 = shalt.err (!%p2512_p7)
}
 0x25d   :  { %2087 = dma.vmem_to_hbm [thread:$0]  %s2085_s11, 32, %s3825_s9, [#allocation8]   ;;  %v1106_v12 = vcombine.low %v2124_v58, %v2125_v10  ;;  %v1201_v14 = vadd.f32 %v1193_v6, %v3185_v31  ;;  %1002 = vst [vmem:[#allocation2] sm:$0xff] %v982_v7  ;;  %v617_v15 = vrot.slane %v3173_v17, %v616_v33  ;;  %v624_v16 = vsub.s32 6, %v2772_v0 }
 0x25e   :  { %vm1216_vm3 = vcmp.gt.f32.partialorder %v3232_v8, 1.0  ;;  %v1334_v18 = vmul.f32 0.9, %v3232_v8  ;;  %vm1218_vm4 = vcmp.gt.f32.partialorder %v3235_v9, 1.0  ;;  %v1336_v19 = vmul.f32 0.9, %v3235_v9 }
 0x25f   :  { %v3260_v20 = vsel %vm1216_vm3, 1.0, %v2589_v29  ;;  %v3263_v21 = vsel %vm1218_vm4, 1.0, %v2589_v29  ;;  %v1161_v22 = vrot.slane %v1153_v5, %v2799_v13  ;;  %v3266_v23 = vsub.f32 %v1201_v14, %v2125_v10  ;;  %s2591_s9 = smov [#allocation4]   ;;  %s2592_s21 = smov [#allocation6]  }
 0x260   :  { %v1342_v24 = vadd.f32 %v1334_v18, %v3181_v26  ;;  %v1344_v25 = vadd.f32 %v1336_v19, %v3183_v27  ;;  %vm1077_vm5 = vcmp.gt.f32.partialorder %v1069_v11, 1.0  ;;  %v1154_v28 = vcombine.low %v3207_v47, %v1069_v11  ;;  %s2061_s20 = sshll.u32 %s2591_s9, 4  ;;  %s2074_s22 = sshll.u32 %s2592_s21, 4  ;;  %s2062_s20 = int_to_ptr.vmem [resolvable:$true] %s2061_s20  ;;  %s3760_s22 = int_to_ptr.vmem [resolvable:$true] %s2074_s22 }
 0x261   :  { %vm1217_vm6 = vcmp.gt.f32.partialorder %v3266_v23, 1.0  ;;  %v1295_v30 = vcombine.low %v3232_v8, %v3266_v23  ;;  %v1335_v33 = vmul.f32 0.9, %v3266_v23  ;;  %v2127_v34 = vsel %vm1077_vm5, 1.0, %v2589_v29  ;;  %s2593_s23 = smov [#allocation2]   ;;  %s2516_s25 = scalar_lea.vmem %s2062_s20, 2048 }
 0x262   :  { %v3277_v35 = vsub.f32 %v1342_v24, %v3260_v20  ;;  %v3280_v36 = vsub.f32 %v1344_v25, %v3263_v21  ;;  %v2133_v37 = vsel %vm1217_vm6, 1.0, %v2589_v29  ;;  %v1107_v38 = vcombine.low %v3222_v59, %v2127_v34  ;;  %s2049_s24 = sshll.u32 %s2593_s23, 4  ;;  %p2517_p8 = scmp.ne.s32.totalorder %s2062_s20, %s2516_s25  ;;  %s3762_s24 = int_to_ptr.vmem [resolvable:$true] %s2049_s24 }
 0x263   :  { %v1114_v39 = vrot.slane %v1106_v12, %v2799_v13  ;;  %v1248_v40 = vcombine.low %v3260_v20, %v2133_v37  ;;  %v1343_v41 = vadd.f32 %v1335_v33, %v3185_v31  ;;  %v1168_v42 = vrot.slane %v1154_v28, %v2799_v13  ;;  %p2521_p9 = scmp.lt.s32.totalorder %s2062_s20, %s2062_s20  ;;  %p2522_p10 = scmp.lt.s32.totalorder %s2516_s25, %s2516_s25 }
 0x264   :  { %vm1358_vm7 = vcmp.gt.f32.partialorder %v3277_v35, 1.0  ;;  %v1476_v43 = vmul.f32 0.9, %v3277_v35  ;;  %vm1360_vm8 = vcmp.gt.f32.partialorder %v3280_v36, 1.0  ;;  %v1478_v44 = vmul.f32 0.9, %v3280_v36 }
 0x265   :  { %v3293_v45 = vsel %vm1358_vm7, 1.0, %v2589_v29  ;;  %v3296_v46 = vsel %vm1360_vm8, 1.0, %v2589_v29  ;;  %v3298_v47 = vsub.f32 %v1343_v41, %v2133_v37  ;;  %v620_v48 = vsub.s32 5, %v2772_v0  ;;  %p2523_p11 = por %p2522_p10, %p2521_p9 }
 0x266   :  { %v1484_v49 = vadd.f32 %v1476_v43, %v3181_v26  ;;  %v1486_v50 = vadd.f32 %v1478_v44, %v3183_v27  ;;  %v1121_v51 = vrot.slane %v1107_v38, %v2799_v13  ;;  %v1169_v52 = vcombine.low %v1161_v22, %v1168_v42 }
 0x267   :  { %vm1359_vm9 = vcmp.gt.f32.partialorder %v3298_v47, 1.0  ;;  %v1437_v53 = vcombine.low %v3277_v35, %v3298_v47  ;;  %v1477_v56 = vmul.f32 0.9, %v3298_v47  ;;  %v1195_v57 = vmul.f32 0.9, %v1069_v11  ;;  %p2524_p12 = pnand %p2523_p11, %p2517_p8 }
 0x268   :  { %v3309_v58 = vsub.f32 %v1484_v49, %v3293_v45  ;;  %v3312_v59 = vsub.f32 %v1486_v50, %v3296_v46  ;;  %v2141_v60 = vsel %vm1359_vm9, 1.0, %v2589_v29  ;;  %v1122_v61 = vcombine.low %v1114_v39, %v1121_v51  ;;  %1190 = vst [vmem:[#allocation4 + $0x10] sm:$0xff] %v1169_v52 }
 0x269   :  { %v1390_v1 = vcombine.low %v3293_v45, %v2141_v60  ;;  %v1485_v2 = vadd.f32 %v1477_v56, %v3185_v31  ;;  %v1203_v3 = vadd.f32 %v1195_v57, %v3187_v32  ;;  %v3319_v4 = vrot.slane %v3173_v17, %v624_v16 }
 0x26a   :  { %vm1500_vm10 = vcmp.gt.f32.partialorder %v3309_v58, 1.0  ;;  %v1618_v5 = vmul.f32 0.9, %v3309_v58  ;;  %vm1502_vm11 = vcmp.gt.f32.partialorder %v3312_v59, 1.0  ;;  %v1620_v6 = vmul.f32 0.9, %v3312_v59 }
 0x26b   :  { %1143 = vst [vmem:[#allocation2 + $0x10] sm:$0xff] %v1122_v61  ;;  %v3325_v7 = vsub.f32 %v1485_v2, %v2141_v60  ;;  %v3328_v8 = vadd.f32 %v3214_v54, %v617_v15  ;;  %v3331_v10 = vrot.slane %v3173_v17, %v620_v48  ;;  %v628_v11 = vsub.s32 7, %v2772_v0 }
 0x26c   :  { %v3335_v12 = vsel %vm1500_vm10, 1.0, %v2589_v29  ;;  %v1626_v14 = vadd.f32 %v1618_v5, %v3181_v26  ;;  %v1628_v16 = vadd.f32 %v1620_v6, %v3183_v27  ;;  %v1211_v18 = vsub.f32 %v1203_v3, %v2127_v34 }
 0x26d   :  { %v3340_v19 = vsel %vm1502_vm11, 1.0, %v2589_v29  ;;  %vm1501_vm12 = vcmp.gt.f32.partialorder %v3325_v7, 1.0  ;;  %v1579_v54 = vcombine.low %v3309_v58, %v3325_v7  ;;  %v1619_v15 = vmul.f32 0.9, %v3325_v7 }
 0x26e   :  { %v1634_v0 = vsub.f32 %v1626_v14, %v3335_v12  ;;  %v3348_v20 = vsub.f32 %v1628_v16, %v3340_v19  ;;  %v2149_v22 = vsel %vm1501_vm12, 1.0, %v2589_v29  ;;  %vm1219_vm13 = vcmp.gt.f32.partialorder %v1211_v18, 1.0 }
 0x26f   :  { %v1303_v23 = vrot.slane %v1295_v30, %v2799_v13  ;;  %v1532_v24 = vcombine.low %v3335_v12, %v2149_v22  ;;  %v1627_v25 = vadd.f32 %v1619_v15, %v3185_v31  ;;  %v2135_v28 = vsel %vm1219_vm13, 1.0, %v2589_v29 }
 0x270   :  { %vm1642_vm14 = vcmp.gt.f32.partialorder %v1634_v0, 1.0  ;;  %v1760_v33 = vmul.f32 0.9, %v1634_v0  ;;  %vm1644_vm15 = vcmp.gt.f32.partialorder %v3348_v20, 1.0  ;;  %v1762_v34 = vmul.f32 0.9, %v3348_v20 }
 0x271   :  { %v3358_v37 = vsel %vm1642_vm14, 1.0, %v2589_v29  ;;  %v1256_v38 = vrot.slane %v1248_v40, %v2799_v13  ;;  %v1635_v39 = vsub.f32 %v1627_v25, %v2149_v22  ;;  %vm938_vm0 = vcmp.gt.f32.partialorder %v3328_v8, 1.0 }
 0x272   :  { %v1768_v30 = vadd.f32 %v1760_v33, %v3181_v26  ;;  %v1770_v41 = vadd.f32 %v1762_v34, %v3183_v27  ;;  %v1249_v42 = vcombine.low %v3263_v21, %v2135_v28  ;;  %v1296_v43 = vcombine.low %v3235_v9, %v1211_v18 }
 0x273   :  { %v3367_v44 = vsel %vm1644_vm15, 1.0, %v2589_v29  ;;  %vm1643_vm1 = vcmp.gt.f32.partialorder %v1635_v39, 1.0  ;;  %v1721_v45 = vcombine.low %v1634_v0, %v1635_v39  ;;  %v1761_v48 = vmul.f32 0.9, %v1635_v39 }
 0x274   :  { %v3370_v49 = vsub.f32 %v1768_v30, %v3358_v37  ;;  %v3373_v40 = vsub.f32 %v1770_v41, %v3367_v44  ;;  %v2157_v50 = vsel %vm1643_vm1, 1.0, %v2589_v29  ;;  %v1263_v51 = vrot.slane %v1249_v42, %v2799_v13 }
 0x275   :  { %v1674_v21 = vcombine.low %v3358_v37, %v2157_v50  ;;  %v1769_v9 = vadd.f32 %v1761_v48, %v3185_v31  ;;  %v1310_v52 = vrot.slane %v1296_v43, %v2799_v13  ;;  %v1337_v56 = vmul.f32 0.9, %v1211_v18 }
 0x276   :  { %vm1784_vm2 = vcmp.gt.f32.partialorder %v3370_v49, 1.0  ;;  %v1902_v57 = vmul.f32 0.9, %v3370_v49  ;;  %v1445_v58 = vrot.slane %v1437_v53, %v2799_v13  ;;  %v3387_v60 = vrot.slane %v3173_v17, %v628_v11 }
 0x277   :  { %v1904_v61 = vmul.f32 0.9, %v3373_v40  ;;  %v1398_v2 = vrot.slane %v1390_v1, %v2799_v13  ;;  %v3391_v3 = vsub.f32 %v1769_v9, %v2157_v50  ;;  %v3396_v5 = vsel %vm938_vm0, 1.0, %v2589_v29 }
 0x278   :  { %v3399_v6 = vsel %vm1784_vm2, 1.0, %v2589_v29  ;;  %v1910_v35 = vadd.f32 %v1902_v57, %v3181_v26  ;;  %v1264_v47 = vcombine.low %v1256_v38, %v1263_v51  ;;  %v1311_v53 = vcombine.low %v1303_v23, %v1310_v52 }
 0x279   :  { %vm1785_vm3 = vcmp.gt.f32.partialorder %v3391_v3, 1.0  ;;  %v1863_v17 = vcombine.low %v3370_v49, %v3391_v3  ;;  %v1903_v1 = vmul.f32 0.9, %v3391_v3  ;;  %v1345_v7 = vadd.f32 %v1337_v56, %v3187_v32 }
 0x27a   :  { %v3408_v11 = vsub.f32 %v1910_v35, %v3399_v6  ;;  %vm1786_vm4 = vcmp.gt.f32.partialorder %v3373_v40, 1.0  ;;  %v3412_v12 = vsel %vm1785_vm3, 1.0, %v2589_v29  ;;  %1285 = vst [vmem:[#allocation2 + $0x20] sm:$0xff] %v1264_v47  ;;  %1332 = vst [vmem:[#allocation4 + $0x20] sm:$0xff] %v1311_v53  ;;  %v1054_v26 = vmul.f32 0.9, %v3328_v8 }
 0x27b   :  { %v3416_v14 = vrot.slane %v1579_v54, %v2799_v13  ;;  %v1816_v16 = vcombine.low %v3399_v6, %v3412_v12  ;;  %v1911_v18 = vadd.f32 %v1903_v1, %v3185_v31  ;;  %v1353_v15 = vsub.f32 %v1345_v7, %v2135_v28 }
 0x27c   :  { %vm1926_vm5 = vcmp.gt.f32.partialorder %v3408_v11, 1.0  ;;  %v3423_v0 = vrot.slane %v1532_v24, %v2799_v13  ;;  %v3426_v22 = vrot.slane %v1721_v45, %v2799_v13  ;;  %v1062_v23 = vadd.f32 %v1054_v26, %v3328_v8 }
 0x27d   :  { %v3430_v25 = vsel %vm1926_vm5, 1.0, %v2589_v29  ;;  %v3433_v54 = vsel %vm1786_vm4, 1.0, %v2589_v29  ;;  %v1912_v33 = vadd.f32 %v1904_v61, %v3183_v27  ;;  %v3437_v31 = vsub.f32 %v1911_v18, %v3412_v12 }
 0x27e   :  { %vm1361_vm6 = vcmp.gt.f32.partialorder %v1353_v15, 1.0  ;;  %v1438_v24 = vcombine.low %v3280_v36, %v1353_v15  ;;  %v1479_v28 = vmul.f32 0.9, %v1353_v15  ;;  %v3441_v34 = vsub.f32 %v1062_v23, %v3396_v5 }
 0x27f   :  { %vm1927_vm7 = vcmp.gt.f32.partialorder %v3437_v31, 1.0  ;;  %v2005_v37 = vcombine.low %v3408_v11, %v3437_v31  ;;  %v2143_v38 = vsel %vm1361_vm6, 1.0, %v2589_v29  ;;  %v3449_v27 = vadd.f32 %v3216_v55, %v3319_v4 }
 0x280   :  { %v3452_v39 = vsel %vm1927_vm7, 1.0, %v2589_v29  ;;  %v1391_v36 = vcombine.low %v3296_v46, %v2143_v38  ;;  %v1452_v30 = vrot.slane %v1438_v24, %v2799_v13  ;;  %v1487_v41 = vadd.f32 %v1479_v28, %v3187_v32 }
 0x281   :  { %v3458_v42 = vrot.slane %v1674_v21, %v2799_v13  ;;  %v1958_v43 = vcombine.low %v3430_v25, %v3452_v39  ;;  %vm1078_vm8 = vcmp.gt.f32.partialorder %v3441_v34, 1.0  ;;  %v1196_v55 = vmul.f32 0.9, %v3441_v34 }
 0x282   :  { %v3465_v4 = vsub.f32 %v1912_v33, %v3433_v54  ;;  %v1405_v45 = vrot.slane %v1391_v36, %v2799_v13  ;;  %v1453_v46 = vcombine.low %v1445_v58, %v1452_v30  ;;  %v1495_v48 = vsub.f32 %v1487_v41, %v2143_v38 }
 0x283   :  { %v3469_v50 = vsel %vm1078_vm8, 1.0, %v2589_v29  ;;  %v1204_v51 = vadd.f32 %v1196_v55, %v3328_v8  ;;  %vm940_vm9 = vcmp.gt.f32.partialorder %v3449_v27, 1.0  ;;  %v1056_v21 = vmul.f32 0.9, %v3449_v27 }
 0x284   :  { %v1406_v9 = vcombine.low %v1398_v2, %v1405_v45  ;;  %1474 = vst [vmem:[#allocation4 + $0x30] sm:$0xff] %v1453_v46  ;;  %vm1503_vm10 = vcmp.gt.f32.partialorder %v1495_v48, 1.0  ;;  %v1580_v52 = vcombine.low %v3312_v59, %v1495_v48  ;;  %v1621_v56 = vmul.f32 0.9, %v1495_v48 }
 0x285   :  { %v2151_v57 = vsel %vm1503_vm10, 1.0, %v2589_v29  ;;  %v3477_v58 = vsub.f32 %v1204_v51, %v3469_v50  ;;  %v1064_v61 = vadd.f32 %v1056_v21, %v3449_v27  ;;  %v3482_v35 = vadd.f32 %v3225_v62, %v3331_v10 }
 0x286   :  { %1427 = vst [vmem:[#allocation2 + $0x30] sm:$0xff] %v1406_v9  ;;  %v1533_v47 = vcombine.low %v3340_v19, %v2151_v57  ;;  %v1594_v2 = vrot.slane %v1580_v52, %v2799_v13  ;;  %v1629_v53 = vadd.f32 %v1621_v56, %v3187_v32  ;;  %v3488_v59 = vsel %vm940_vm9, 1.0, %v2589_v29 }
 0x287   :  { %vm1220_vm11 = vcmp.gt.f32.partialorder %v3477_v58, 1.0  ;;  %v1338_v1 = vmul.f32 0.9, %v3477_v58  ;;  %v3493_v7 = vsub.f32 %v1064_v61, %v3488_v59  ;;  %vm939_vm12 = vcmp.gt.f32.partialorder %v3482_v35, 1.0 }
 0x288   :  { %v1547_v62 = vrot.slane %v1533_v47, %v2799_v13  ;;  %v1595_v10 = vcombine.low %v3416_v14, %v1594_v2  ;;  %v1637_v19 = vsub.f32 %v1629_v53, %v2151_v57  ;;  %v3499_v26 = vsel %vm1220_vm11, 1.0, %v2589_v29 }
 0x289   :  { %v1346_v18 = vadd.f32 %v1338_v1, %v3328_v8  ;;  %vm1080_vm13 = vcmp.gt.f32.partialorder %v3493_v7, 1.0  ;;  %v1198_v15 = vmul.f32 0.9, %v3493_v7  ;;  %v3505_v23 = vsel %vm939_vm12, 1.0, %v2589_v29 }
 0x28a   :  { %v1548_v33 = vcombine.low %v3423_v0, %v1547_v62  ;;  %1616 = vst [vmem:[#allocation4 + $0x40] sm:$0xff] %v1595_v10  ;;  %vm1645_vm14 = vcmp.gt.f32.partialorder %v1637_v19, 1.0  ;;  %v1722_v24 = vcombine.low %v3348_v20, %v1637_v19  ;;  %v1763_v14 = vmul.f32 0.9, %v1637_v19 }
 0x28b   :  { %v2159_v28 = vsel %vm1645_vm14, 1.0, %v2589_v29  ;;  %v3511_v38 = vsub.f32 %v1346_v18, %v3499_v26  ;;  %v3514_v36 = vsel %vm1080_vm13, 1.0, %v2589_v29  ;;  %v1206_v30 = vadd.f32 %v1198_v15, %v3449_v27 }
 0x28c   :  { %1569 = vst [vmem:[#allocation2 + $0x40] sm:$0xff] %v1548_v33  ;;  %v1675_v41 = vcombine.low %v3367_v44, %v2159_v28  ;;  %v1736_v0 = vrot.slane %v1722_v24, %v2799_v13  ;;  %v1771_v55 = vadd.f32 %v1763_v14, %v3187_v32  ;;  %v983_v20 = vcombine.low %v3396_v5, %v3505_v23 }
 0x28d   :  { %vm1362_vm15 = vcmp.gt.f32.partialorder %v3511_v38, 1.0  ;;  %v1480_v45 = vmul.f32 0.9, %v3511_v38  ;;  %v3525_v46 = vsub.f32 %v1206_v30, %v3514_v36  ;;  %v1029_v48 = vcombine.low %v3328_v8, %v3482_v35 }
 0x28e   :  { %v1871_v44 = vrot.slane %v1863_v17, %v2799_v13  ;;  %v1689_v51 = vrot.slane %v1675_v41, %v2799_v13  ;;  %v1737_v21 = vcombine.low %v3426_v22, %v1736_v0  ;;  %v1779_v9 = vsub.f32 %v1771_v55, %v2159_v28 }
 0x28f   :  { %v3536_v52 = vsel %vm1362_vm15, 1.0, %v2589_v29  ;;  %v1488_v56 = vadd.f32 %v1480_v45, %v3328_v8  ;;  %vm1222_vm0 = vcmp.gt.f32.partialorder %v3525_v46, 1.0  ;;  %v1340_v57 = vmul.f32 0.9, %v3525_v46 }
 0x290   :  { %v1690_v61 = vcombine.low %v3458_v42, %v1689_v51  ;;  %1758 = vst [vmem:[#allocation4 + $0x50] sm:$0xff] %v1737_v21  ;;  %vm1787_vm1 = vcmp.gt.f32.partialorder %v1779_v9, 1.0  ;;  %v1864_v49 = vcombine.low %v3373_v40, %v1779_v9  ;;  %v1905_v3 = vmul.f32 0.9, %v1779_v9 }
 0x291   :  { %vm1928_vm2 = vcmp.gt.f32.partialorder %v3465_v4, 1.0  ;;  %v2167_v17 = vsel %vm1787_vm1, 1.0, %v2589_v29  ;;  %v3546_v22 = vsub.f32 %v1488_v56, %v3536_v52  ;;  %v1348_v47 = vadd.f32 %v1340_v57, %v3449_v27 }
 0x292   :  { %v1824_v2 = vrot.slane %v1816_v16, %v2799_v13  ;;  %1711 = vst [vmem:[#allocation2 + $0x50] sm:$0xff] %v1690_v61  ;;  %v1817_v42 = vcombine.low %v3433_v54, %v2167_v17  ;;  %v1878_v40 = vrot.slane %v1864_v49, %v2799_v13  ;;  %v1913_v53 = vadd.f32 %v1905_v3, %v3187_v32 }
 0x293   :  { %v3559_v1 = vsel %vm1222_vm0, 1.0, %v2589_v29  ;;  %v1055_v62 = vmul.f32 0.9, %v3482_v35  ;;  %v3564_v10 = vadd.f32 %v3227_v63, %v3387_v60  ;;  %v1622_v54 = vmul.f32 0.9, %v3546_v22 }
 0x294   :  { %v1831_v6 = vrot.slane %v1817_v42, %v2799_v13  ;;  %v1879_v12 = vcombine.low %v1871_v44, %v1878_v40  ;;  %v1921_v16 = vsub.f32 %v1913_v53, %v2167_v17  ;;  %v2174_v32 = vsel %vm1928_vm2, 1.0, %v2589_v29 }
 0x295   :  { %v3572_v19 = vsub.f32 %v1348_v47, %v3559_v1  ;;  %v1063_v18 = vadd.f32 %v1055_v62, %v3482_v35  ;;  %v2013_v63 = vrot.slane %v2005_v37, %v2799_v13  ;;  %v1966_v33 = vrot.slane %v1958_v43, %v2799_v13 }
 0x296   :  { %v1832_v60 = vcombine.low %v1824_v2, %v1831_v6  ;;  %1900 = vst [vmem:[#allocation4 + $0x60] sm:$0xff] %v1879_v12  ;;  %vm1929_vm3 = vcmp.gt.f32.partialorder %v1921_v16, 1.0  ;;  %v2006_v15 = vcombine.low %v3465_v4, %v1921_v16  ;;  %vm1504_vm4 = vcmp.gt.f32.partialorder %v3546_v22, 1.0 }
 0x297   :  { %v2175_v24 = vsel %vm1929_vm3, 1.0, %v2589_v29  ;;  %v1071_v14 = vsub.f32 %v1063_v18, %v3505_v23  ;;  %v1630_v31 = vadd.f32 %v1622_v54, %v3328_v8  ;;  %v1030_v37 = vcombine.low %v3449_v27, %v3564_v10 }
 0x298   :  { %1853 = vst [vmem:[#allocation2 + $0x60] sm:$0xff] %v1832_v60  ;;  %v1959_v28 = vcombine.low %v2174_v32, %v2175_v24  ;;  %v2020_v11 = vrot.slane %v2006_v15, %v2799_v13  ;;  %v1482_v4 = vmul.f32 0.9, %v3572_v19  ;;  %vm941_vm6 = vcmp.gt.f32.partialorder %v3564_v10, 1.0 }
 0x299   :  { %vm1079_vm5 = vcmp.gt.f32.partialorder %v1071_v14, 1.0  ;;  %v3596_v30 = vsel %vm1504_vm4, 1.0, %v2589_v29  ;;  %v1037_v41 = vrot.slane %v1029_v48, %v2799_v13  ;;  %v1170_v44 = vcombine.low %v3441_v34, %v1071_v14 }
 0x29a   :  { %v1973_v25 = vrot.slane %v1959_v28, %v2799_v13  ;;  %v2021_v39 = vcombine.low %v2013_v63, %v2020_v11  ;;  %v2129_v43 = vsel %vm1079_vm5, 1.0, %v2589_v29  ;;  %v3601_v45 = vsub.f32 %v1630_v31, %v3596_v30 }
 0x29b   :  { %v1123_v0 = vcombine.low %v3469_v50, %v2129_v43  ;;  %v1197_v51 = vmul.f32 0.9, %v1071_v14  ;;  %vm1364_vm7 = vcmp.gt.f32.partialorder %v3572_v19, 1.0  ;;  %v2123_v21 = vsel %vm941_vm6, 1.0, %v2589_v29 }
 0x29c   :  { %v1974_v55 = vcombine.low %v1966_v33, %v1973_v25  ;;  %2042 = vst [vmem:[#allocation4 + $0x70] sm:$0xff] %v2021_v39  ;;  %v1490_v9 = vadd.f32 %v1482_v4, %v3449_v27  ;;  %v984_v48 = vcombine.low %v3488_v59, %v2123_v21  ;;  %v1044_v50 = vrot.slane %v1030_v37, %v2799_v13 }
 0x29d   :  { %v1205_v56 = vadd.f32 %v1197_v51, %v3482_v35  ;;  %v991_v57 = vrot.slane %v983_v20, %v2799_v13  ;;  %v1057_v34 = vmul.f32 0.9, %v3564_v10  ;;  %v1764_v61 = vmul.f32 0.9, %v3601_v45 }
 0x29e   :  { %1995 = vst [vmem:[#allocation2 + $0x70] sm:$0xff] %v1974_v55  ;;  %v998_v3 = vrot.slane %v984_v48, %v2799_v13  ;;  %v1045_v17 = vcombine.low %v1037_v41, %v1044_v50  ;;  %v3618_v47 = vsel %vm1364_vm7, 1.0, %v2589_v29  ;;  %vm1646_vm9 = vcmp.gt.f32.partialorder %v3601_v45, 1.0 }
 0x29f   :  { %v1213_v49 = vsub.f32 %v1205_v56, %v2129_v43  ;;  %v1065_v59 = vadd.f32 %v1057_v34, %v3564_v10  ;;  %v3622_v2 = vsub.f32 %v1490_v9, %v3618_v47  ;;  %v1772_v40 = vadd.f32 %v1764_v61, %v3328_v8 }
 0x2a0   :  { %1049 = vst [vmem:[#allocation4 + $0x8] sm:$0xff] %v1045_v17  ;;  %v999_v42 = vcombine.low %v991_v57, %v998_v3  ;;  %v3631_v12 = vsel %vm1646_vm9, 1.0, %v2589_v29  ;;  %v1178_v54 = vrot.slane %v1170_v44, %v2799_v13  ;;  %v1131_v15 = vrot.slane %v1123_v0, %v2799_v13 }
 0x2a1   :  { %vm1221_vm8 = vcmp.gt.f32.partialorder %v1213_v49, 1.0  ;;  %v1312_v5 = vcombine.low %v3477_v58, %v1213_v49  ;;  %v1339_v23 = vmul.f32 0.9, %v1213_v49  ;;  %v1073_v6 = vsub.f32 %v1065_v59, %v2123_v21 }
 0x2a2   :  { %v2137_v20 = vsel %vm1221_vm8, 1.0, %v2589_v29  ;;  %1003 = vst [vmem:[#allocation2 + $0x8] sm:$0xff] %v999_v42  ;;  %v1624_v58 = vmul.f32 0.9, %v3622_v2  ;;  %vm1506_vm11 = vcmp.gt.f32.partialorder %v3622_v2, 1.0 }
 0x2a3   :  { %v1265_v53 = vcombine.low %v3499_v26, %v2137_v20  ;;  %v1347_v62 = vadd.f32 %v1339_v23, %v3482_v35  ;;  %vm1081_vm10 = vcmp.gt.f32.partialorder %v1073_v6, 1.0  ;;  %v1171_v18 = vcombine.low %v3493_v7, %v1073_v6 }
 0x2a4   :  { %v2131_v32 = vsel %vm1081_vm10, 1.0, %v2589_v29  ;;  %v3639_v26 = vsub.f32 %v1772_v40, %v3631_v12  ;;  %v1632_v28 = vadd.f32 %v1624_v58, %v3449_v27  ;;  %v1199_v31 = vmul.f32 0.9, %v1073_v6 }
 0x2a5   :  { %v1355_v16 = vsub.f32 %v1347_v62, %v2137_v20  ;;  %v1124_v24 = vcombine.low %v3514_v36, %v2131_v32  ;;  %v1185_v14 = vrot.slane %v1171_v18, %v2799_v13  ;;  %v3658_v36 = vsel %vm1506_vm11, 1.0, %v2589_v29 }
 0x2a6   :  { %v1207_v39 = vadd.f32 %v1199_v31, %v3564_v10  ;;  %vm1788_vm13 = vcmp.gt.f32.partialorder %v3639_v26, 1.0  ;;  %v3661_v43 = vsub.f32 %v1632_v28, %v3658_v36  ;;  %v1320_v48 = vrot.slane %v1312_v5, %v2799_v13 }
 0x2a7   :  { %vm1363_vm12 = vcmp.gt.f32.partialorder %v1355_v16, 1.0  ;;  %v1454_v63 = vcombine.low %v3511_v38, %v1355_v16  ;;  %v1481_v60 = vmul.f32 0.9, %v1355_v16  ;;  %v1138_v37 = vrot.slane %v1124_v24, %v2799_v13 }
 0x2a8   :  { %v2145_v33 = vsel %vm1363_vm12, 1.0, %v2589_v29  ;;  %v1186_v4 = vcombine.low %v1178_v54, %v1185_v14  ;;  %v1906_v38 = vmul.f32 0.9, %v3639_v26  ;;  %v1215_v44 = vsub.f32 %v1207_v39, %v2131_v32 }
 0x2a9   :  { %v1407_v11 = vcombine.low %v3536_v52, %v2145_v33  ;;  %v1489_v7 = vadd.f32 %v1481_v60, %v3482_v35  ;;  %v1139_v52 = vcombine.low %v1131_v15, %v1138_v37  ;;  %v3671_v51 = vsel %vm1788_vm13, 1.0, %v2589_v29 }
 0x2aa   :  { %1191 = vst [vmem:[#allocation4 + $0x18] sm:$0xff] %v1186_v4  ;;  %v1914_v21 = vadd.f32 %v1906_v38, %v3328_v8  ;;  %vm1223_vm15 = vcmp.gt.f32.partialorder %v1215_v44, 1.0  ;;  %v1341_v50 = vmul.f32 0.9, %v1215_v44  ;;  %vm1648_vm0 = vcmp.gt.f32.partialorder %v3661_v43, 1.0 }
 0x2ab   :  { %v3651_v25 = vsub.f32 %v1489_v7, %v2145_v33  ;;  %1144 = vst [vmem:[#allocation2 + $0x18] sm:$0xff] %v1139_v52  ;;  %v1766_v57 = vmul.f32 0.9, %v3661_v43  ;;  %v2139_v8 = vsel %vm1223_vm15, 1.0, %v2589_v29  ;;  %v1273_v61 = vrot.slane %v1265_v53, %v2799_v13 }
 0x2ac   :  { %v1349_v3 = vadd.f32 %v1341_v50, %v3564_v10  ;;  %v1462_v40 = vrot.slane %v1454_v63, %v2799_v13  ;;  %v2162_v16 = vsel %vm1648_vm0, 1.0, %v2589_v29 }
 0x2ad   :  { %vm1505_vm14 = vcmp.gt.f32.partialorder %v3651_v25, 1.0  ;;  %v1596_v41 = vcombine.low %v3546_v22, %v3651_v25  ;;  %v1623_v0 = vmul.f32 0.9, %v3651_v25  ;;  %v1313_v22 = vcombine.low %v3525_v46, %v1215_v44 }
 0x2ae   :  { %v3668_v55 = vsel %vm1505_vm14, 1.0, %v2589_v29  ;;  %v3690_v46 = vsub.f32 %v1914_v21, %v3671_v51  ;;  %v1357_v20 = vsub.f32 %v1349_v3, %v2139_v8  ;;  %v1774_v42 = vadd.f32 %v1766_v57, %v3449_v27 }
 0x2af   :  { %v1549_v9 = vcombine.low %v3596_v30, %v3668_v55  ;;  %v1631_v56 = vadd.f32 %v1623_v0, %v3482_v35  ;;  %v1266_v30 = vcombine.low %v3559_v1, %v2139_v8  ;;  %v1327_v49 = vrot.slane %v1313_v22, %v2799_v13 }
 0x2b0   :  { %vm1365_vm2 = vcmp.gt.f32.partialorder %v1357_v20, 1.0  ;;  %v1483_v58 = vmul.f32 0.9, %v1357_v20  ;;  %vm1930_vm3 = vcmp.gt.f32.partialorder %v3690_v46, 1.0  ;;  %v3716_v60 = vsub.f32 %v1774_v42, %v2162_v16 }
 0x2b1   :  { %v3682_v34 = vsub.f32 %v1631_v56, %v3668_v55  ;;  %v1280_v23 = vrot.slane %v1266_v30, %v2799_v13  ;;  %v1328_v1 = vcombine.low %v1320_v48, %v1327_v49  ;;  %v2147_v32 = vsel %vm1365_vm2, 1.0, %v2589_v29 }
 0x2b2   :  { %v1408_v18 = vcombine.low %v3618_v47, %v2147_v32  ;;  %v1908_v25 = vmul.f32 0.9, %v3716_v60  ;;  %vm1790_vm6 = vcmp.gt.f32.partialorder %v3716_v60, 1.0 }
 0x2b3   :  { %vm1647_vm1 = vcmp.gt.f32.partialorder %v3682_v34, 1.0  ;;  %v1738_v17 = vcombine.low %v3601_v45, %v3682_v34  ;;  %v1765_v59 = vmul.f32 0.9, %v3682_v34  ;;  %v1281_v6 = vcombine.low %v1273_v61, %v1280_v23  ;;  %1333 = vst [vmem:[#allocation4 + $0x28] sm:$0xff] %v1328_v1 }
 0x2b4   :  { %v3697_v5 = vsel %vm1647_vm1, 1.0, %v2589_v29  ;;  %v1455_v45 = vcombine.low %v3572_v19, %v1357_v20  ;;  %v1491_v19 = vadd.f32 %v1483_v58, %v3564_v10  ;;  %v1422_v14 = vrot.slane %v1408_v18, %v2799_v13 }
 0x2b5   :  { %v1691_v53 = vcombine.low %v3631_v12, %v3697_v5  ;;  %v1773_v62 = vadd.f32 %v1765_v59, %v3482_v35  ;;  %v1415_v12 = vrot.slane %v1407_v11, %v2799_v13  ;;  %1286 = vst [vmem:[#allocation2 + $0x28] sm:$0xff] %v1281_v6  ;;  %v1604_v11 = vrot.slane %v1596_v41, %v2799_v13 }
 0x2b6   :  { %v1469_v63 = vrot.slane %v1455_v45, %v2799_v13  ;;  %v1499_v7 = vsub.f32 %v1491_v19, %v2147_v32  ;;  %v1557_v41 = vrot.slane %v1549_v9, %v2799_v13  ;;  %v1916_v9 = vadd.f32 %v1908_v25, %v3449_v27 }
 0x2b7   :  { %v1781_v54 = vsub.f32 %v1773_v62, %v3697_v5  ;;  %v1423_v37 = vcombine.low %v1415_v12, %v1422_v14  ;;  %v1746_v48 = vrot.slane %v1738_v17, %v2799_v13  ;;  %v2170_v34 = vsel %vm1790_vm6, 1.0, %v2589_v29 }
 0x2b8   :  { %v1470_v28 = vcombine.low %v1462_v40, %v1469_v63  ;;  %vm1507_vm5 = vcmp.gt.f32.partialorder %v1499_v7, 1.0  ;;  %v1597_v4 = vcombine.low %v3622_v2, %v1499_v7  ;;  %v1625_v38 = vmul.f32 0.9, %v1499_v7 }
 0x2b9   :  { %vm1789_vm4 = vcmp.gt.f32.partialorder %v1781_v54, 1.0  ;;  %v1880_v15 = vcombine.low %v3639_v26, %v1781_v54  ;;  %v1907_v33 = vmul.f32 0.9, %v1781_v54  ;;  %v2176_v26 = vsel %vm1930_vm3, 1.0, %v2589_v29  ;;  %1428 = vst [vmem:[#allocation2 + $0x38] sm:$0xff] %v1423_v37 }
 0x2ba   :  { %v2169_v24 = vsel %vm1789_vm4, 1.0, %v2589_v29  ;;  %1475 = vst [vmem:[#allocation4 + $0x38] sm:$0xff] %v1470_v28  ;;  %v2155_v52 = vsel %vm1507_vm5, 1.0, %v2589_v29  ;;  %v1611_v0 = vrot.slane %v1597_v4, %v2799_v13  ;;  %v1633_v55 = vadd.f32 %v1625_v38, %v3564_v10 }
 0x2bb   :  { %v1833_v47 = vcombine.low %v3671_v51, %v2169_v24  ;;  %v1915_v31 = vadd.f32 %v1907_v33, %v3482_v35  ;;  %v1550_v35 = vcombine.low %v3658_v36, %v2155_v52  ;;  %v1699_v61 = vrot.slane %v1691_v53, %v2799_v13 }
 0x2bc   :  { %v1612_v21 = vcombine.low %v1604_v11, %v1611_v0  ;;  %v1641_v56 = vsub.f32 %v1633_v55, %v2155_v52  ;;  %v1924_v3 = vsub.f32 %v1916_v9, %v2170_v34 }
 0x2bd   :  { %v1923_v39 = vsub.f32 %v1915_v31, %v2169_v24  ;;  %v1564_v51 = vrot.slane %v1550_v35, %v2799_v13  ;;  %v1841_v42 = vrot.slane %v1833_v47, %v2799_v13 }
 0x2be   :  { %1617 = vst [vmem:[#allocation4 + $0x48] sm:$0xff] %v1612_v21  ;;  %vm1649_vm8 = vcmp.gt.f32.partialorder %v1641_v56, 1.0  ;;  %v1739_v50 = vcombine.low %v3661_v43, %v1641_v56  ;;  %v1767_v57 = vmul.f32 0.9, %v1641_v56  ;;  %v1888_v43 = vrot.slane %v1880_v15, %v2799_v13 }
 0x2bf   :  { %vm1931_vm7 = vcmp.gt.f32.partialorder %v1923_v39, 1.0  ;;  %v2022_v2 = vcombine.low %v3690_v46, %v1923_v39  ;;  %v1565_v22 = vcombine.low %v1557_v41, %v1564_v51  ;;  %v2163_v8 = vsel %vm1649_vm8, 1.0, %v2589_v29 }
 0x2c0   :  { %v2177_v44 = vsel %vm1931_vm7, 1.0, %v2589_v29  ;;  %v1692_v30 = vcombine.low %v2162_v16, %v2163_v8  ;;  %v1753_v49 = vrot.slane %v1739_v50, %v2799_v13  ;;  %v1775_v27 = vadd.f32 %v1767_v57, %v3564_v10 }
 0x2c1   :  { %v1975_v36 = vcombine.low %v2176_v26, %v2177_v44  ;;  %1570 = vst [vmem:[#allocation2 + $0x48] sm:$0xff] %v1565_v22  ;;  %vm1932_vm10 = vcmp.gt.f32.partialorder %v1924_v3, 1.0  ;;  %v2030_v54 = vrot.slane %v2022_v2, %v2799_v13 }
 0x2c2   :  { %v1706_v46 = vrot.slane %v1692_v30, %v2799_v13  ;;  %v1754_v17 = vcombine.low %v1746_v48, %v1753_v49  ;;  %v1783_v59 = vsub.f32 %v1775_v27, %v2163_v8  ;;  %v2178_v16 = vsel %vm1932_vm10, 1.0, %v2589_v29 }
 0x2c3   :  { %v1983_v63 = vrot.slane %v1975_v36, %v2799_v13 }
 0x2c4   :  { %v1707_v5 = vcombine.low %v1699_v61, %v1706_v46  ;;  %1759 = vst [vmem:[#allocation4 + $0x58] sm:$0xff] %v1754_v17  ;;  %vm1791_vm9 = vcmp.gt.f32.partialorder %v1783_v59, 1.0  ;;  %v1881_v23 = vcombine.low %v3716_v60, %v1783_v59  ;;  %v1909_v1 = vmul.f32 0.9, %v1783_v59 }
 0x2c5   :  { %v2171_v20 = vsel %vm1791_vm9, 1.0, %v2589_v29 }
 0x2c6   :  { %1712 = vst [vmem:[#allocation2 + $0x58] sm:$0xff] %v1707_v5  ;;  %v1834_v40 = vcombine.low %v2170_v34, %v2171_v20  ;;  %v1895_v53 = vrot.slane %v1881_v23, %v2799_v13  ;;  %v1917_v62 = vadd.f32 %v1909_v1, %v3564_v10 }
 0x2c8   :  { %v1848_v6 = vrot.slane %v1834_v40, %v2799_v13  ;;  %v1896_v45 = vcombine.low %v1888_v43, %v1895_v53  ;;  %v1925_v58 = vsub.f32 %v1917_v62, %v2171_v20 }
 0x2ca   :  { %v1849_v32 = vcombine.low %v1841_v42, %v1848_v6  ;;  %1901 = vst [vmem:[#allocation4 + $0x68] sm:$0xff] %v1896_v45  ;;  %vm1933_vm11 = vcmp.gt.f32.partialorder %v1925_v58, 1.0  ;;  %v2023_v12 = vcombine.low %v1924_v3, %v1925_v58 }
 0x2cb   :  { %v2179_v18 = vsel %vm1933_vm11, 1.0, %v2589_v29 }
 0x2cc   :  { %1854 = vst [vmem:[#allocation2 + $0x68] sm:$0xff] %v1849_v32  ;;  %v1976_v10 = vcombine.low %v2178_v16, %v2179_v18  ;;  %v2037_v19 = vrot.slane %v2023_v12, %v2799_v13 }
 0x2ce   :  { %v1990_v60 = vrot.slane %v1976_v10, %v2799_v13  ;;  %v2038_v15 = vcombine.low %v2030_v54, %v2037_v19 }
 0x2d0   :  { %v1991_v33 = vcombine.low %v1983_v63, %v1990_v60  ;;  %2043 = vst [vmem:[#allocation4 + $0x78] sm:$0xff] %v2038_v15 }
 0x2d1   :  { %2527 = shalt.err (!%p2524_p12)
}
 0x2d2   :  { %s2528_s0 = scalar_lea.hbm %s3823_s7, 2048 }
 0x2d3   :  { %p2529_p13 = scmp.ne.s32.totalorder %s3823_s7, %s2528_s0  ;;  %p2532_p0 = scmp.lt.u32.totalorder %s2528_s0, %s3823_s7 }
 0x2d5   :  { %p2534_p1 = pnand %p2532_p0, %p2529_p13 }
 0x2d7   :  { %2537 = shalt.err (!%p2534_p1)
}
 0x2d8   :  { %s2594_s3 = smov 256   ;;  %s2595_s10 = smov 16   ;;  %1996 = vst [vmem:[#allocation2 + $0x78] sm:$0xff] %v1991_v33 }
 0x2d9   :  { %2067 = dma.vmem_to_hbm [thread:$0]  %s2062_s20, 2048, %s3823_s7, [#allocation5], %s2594_s3, %s2594_s3, %s2595_s10  }
 0x2da   :  { %s2538_s12 = scalar_lea.vmem %s3760_s22, 32  ;;  %p2543_p3 = scmp.lt.s32.totalorder %s3760_s22, %s3760_s22 }
 0x2db   :  { %p2539_p2 = scmp.ne.s32.totalorder %s3760_s22, %s2538_s12  ;;  %p2544_p4 = scmp.lt.s32.totalorder %s2538_s12, %s2538_s12 }
 0x2dd   :  { %p2545_p5 = por %p2544_p4, %p2543_p3 }
 0x2df   :  { %p2546_p6 = pnand %p2545_p5, %p2539_p2 }
 0x2e1   :  { %2549 = shalt.err (!%p2546_p6)
}
 0x2e2   :  { %s2550_s15 = scalar_lea.hbm %s3824_s8, 32 }
 0x2e3   :  { %p2551_p7 = scmp.ne.s32.totalorder %s3824_s8, %s2550_s15  ;;  %p2554_p8 = scmp.lt.u32.totalorder %s2550_s15, %s3824_s8 }
 0x2e5   :  { %p2556_p9 = pnand %p2554_p8, %p2551_p7 }
 0x2e7   :  { %2559 = shalt.err (!%p2556_p9)
}
 0x2e8   :  { %2077 = dma.vmem_to_hbm [thread:$0]  %s3760_s22, 32, %s3824_s8, [#allocation5]  }
 0x2e9   :  { %s2560_s19 = scalar_lea.vmem %s3762_s24, 2048  ;;  %p2565_p11 = scmp.lt.s32.totalorder %s3762_s24, %s3762_s24 }
 0x2ea   :  { %p2561_p10 = scmp.ne.s32.totalorder %s3762_s24, %s2560_s19  ;;  %p2566_p12 = scmp.lt.s32.totalorder %s2560_s19, %s2560_s19 }
 0x2ec   :  { %p2567_p13 = por %p2566_p12, %p2565_p11 }
 0x2ee   :  { %p2568_p0 = pnand %p2567_p13, %p2561_p10 }
 0x2f0   :  { %2571 = shalt.err (!%p2568_p0)
}
 0x2f1   :  { %s2572_s21 = scalar_lea.hbm %s3822_s6, 2048 }
 0x2f2   :  { %p2573_p1 = scmp.ne.s32.totalorder %s3822_s6, %s2572_s21  ;;  %p2576_p2 = scmp.lt.u32.totalorder %s2572_s21, %s3822_s6 }
 0x2f4   :  { %p2578_p3 = pnand %p2576_p2, %p2573_p1 }
 0x2f6   :  { %2581 = shalt.err (!%p2578_p3)
}
 0x2f7   :  { %2055 = dma.vmem_to_hbm [thread:$0]  %s3762_s24, 2048, %s3822_s6, [#allocation3], %s2594_s3, %s2594_s3, %s2595_s10  }
 0x2f8   :  { %2582 = dma.done.wait [#allocation3], 2048  }
 0x2f9   :  { %2583 = vsyncadd [#allocation3], 4294965248 }
 0x2fa   :  { %2584 = dma.done.wait [#allocation5], 2080  }
 0x2fb   :  { %2585 = vsyncadd [#allocation5], 4294965216 }
 0x2fc   :  { %2586 = dma.done.wait [#allocation8], 32  }
 0x2fd   :  { %2587 = vsyncadd [#allocation8], 4294967264 }
 0x2fe   :  { %2100 = vsyncpa [#allocation3], 1 }
 0x2ff   :  { %2101 = vsyncpa [#allocation5], 1 }
 0x300   :  { %2102 = vsyncpa [#allocation8], 1 }

</bundles_post_ra>
